<compile_context>
chip_gen: v7x
topology: tpu7x:2x2x1
jax: 0.10.0
libtpu: 0.0.40
codegen_flags: <defaults>
</compile_context>

<pallas_src>
import functools
import math

import jax
import jax.numpy as jnp
from jax.experimental import pallas as pl
from jax.experimental.pallas import tpu as pltpu


_VMEM_LIMIT_BYTES = 48 * 1024 * 1024  # > v5e 16 MiB default, < v7x 64 MiB physical


def _cp(dimension_semantics):
    return pltpu.CompilerParams(dimension_semantics=dimension_semantics,
                                vmem_limit_bytes=_VMEM_LIMIT_BYTES)


# ---------------------------------------------------------------------------
# Pallas kernels
# ---------------------------------------------------------------------------

def _linear_kernel(x_ref, w_ref, b_ref, o_ref):
    # y = x @ W + b ; bf16 MXU operands (W already bf16), f32 accumulation.
    y = jnp.dot(x_ref[...].astype(jnp.bfloat16), w_ref[...],
                preferred_element_type=jnp.float32)
    o_ref[...] = (y + b_ref[...]).astype(o_ref.dtype)


def _flash_attn_kernel(q_ref, k_ref, v_ref, o_ref, m_ref, l_ref, acc_ref,
                       *, scale, kv_len, kv_tile):
    # q/k/v: (hb, L, dk) bf16 with (batch*heads) folded into the leading dim.
    # grid = (head_blocks, kv_blocks); kv axis is the online-softmax reduction.
    kv = pl.program_id(1)

    @pl.when(kv == 0)
    def _():
        m_ref[...] = jnp.full(m_ref.shape, -jnp.inf, jnp.float32)
        l_ref[...] = jnp.zeros(l_ref.shape, jnp.float32)
        acc_ref[...] = jnp.zeros(acc_ref.shape, jnp.float32)

    # Fold 1/sqrt(dk) into q (lq*dk elements, not lq*lk).
    q = (q_ref[...].astype(jnp.float32) * scale).astype(jnp.bfloat16)
    s = jnp.einsum('bqd,bkd->bqk', q, k_ref[...],
                   preferred_element_type=jnp.float32)
    if kv_len % kv_tile != 0:
        # Trailing KV tile is zero/garbage-padded: mask it out of the softmax.
        idx = jax.lax.broadcasted_iota(jnp.int32, s.shape, 2) + kv * kv_tile
        s = jnp.where(idx < kv_len, s, -jnp.inf)

    m_prev = m_ref[...]
    m_new = jnp.maximum(m_prev, jnp.max(s, axis=-1, keepdims=True))
    alpha = jnp.exp(m_prev - m_new)
    p = jnp.exp(s - m_new)
    l_ref[...] = alpha * l_ref[...] + jnp.sum(p, axis=-1, keepdims=True)
    acc_ref[...] = alpha * acc_ref[...] + jnp.einsum(
        'bqk,bkd->bqd', p.astype(jnp.bfloat16), v_ref[...],
        preferred_element_type=jnp.float32)
    m_ref[...] = m_new

    @pl.when(kv == pl.num_programs(1) - 1)
    def _():
        o_ref[...] = (acc_ref[...] *
                      pl.reciprocal(l_ref[...], approx=True)).astype(o_ref.dtype)


def _layernorm(y, g, b, eps):
    mu = jnp.mean(y, axis=-1, keepdims=True)
    yc = y - mu
    var = jnp.mean(yc * yc, axis=-1, keepdims=True)
    return yc * jax.lax.rsqrt(var + eps) * g + b


def _attn_out_norm_kernel(ctx_ref, res_ref, wo_ref, bo_ref, g_ref, be_ref,
                          o_ref, *, eps):
    # LayerNorm(residual + ctx @ Wo + bo)  (cross-attention epilogue)
    y = jnp.dot(ctx_ref[...], wo_ref[...],
                preferred_element_type=jnp.float32) + bo_ref[...]
    o_ref[...] = _layernorm(y + res_ref[...], g_ref[...], be_ref[...], eps)


def _layer_epilogue_kernel(ctx_ref, res_ref, wo_ref, bo_ref, g1_ref, be1_ref,
                           w1_ref, b1_ref, w2_ref, b2_ref, g2_ref, be2_ref,
                           o_ref, *, eps):
    # Fused transformer-layer tail:
    #   x1 = LN1(res + ctx @ Wo + bo)
    #   o  = LN2(x1 + W2 @ relu(W1 @ x1))          (dropout = identity in eval)
    y = jnp.dot(ctx_ref[...], wo_ref[...],
                preferred_element_type=jnp.float32) + bo_ref[...]
    x1 = _layernorm(y + res_ref[...], g1_ref[...], be1_ref[...], eps)
    h = jnp.dot(x1.astype(jnp.bfloat16), w1_ref[...],
                preferred_element_type=jnp.float32) + b1_ref[...]
    h = jnp.maximum(h, 0.0)
    y2 = jnp.dot(h.astype(jnp.bfloat16), w2_ref[...],
                 preferred_element_type=jnp.float32) + b2_ref[...]
    o_ref[...] = _layernorm(y2 + x1, g2_ref[...], be2_ref[...], eps)


def _pool_head_kernel(x_ref, w_ref, b_ref, o_ref, acc_ref,
                      *, inv_len, seq_len, seq_tile):
    # Seq-tiled mean-pool accumulation + fused [fc_mu | fc_var] projection.
    t = pl.program_id(0)

    @pl.when(t == 0)
    def _():
        acc_ref[...] = jnp.zeros(acc_ref.shape, jnp.float32)

    xs = x_ref[...]                                           # (B, lt, D)
    if seq_len % seq_tile != 0:
        idx = jax.lax.broadcasted_iota(jnp.int32, xs.shape, 1) + t * seq_tile
        xs = jnp.where(idx < seq_len, xs, 0.0)
    acc_ref[...] += jnp.sum(xs, axis=1)

    @pl.when(t == pl.num_programs(0) - 1)
    def _():
        pooled = acc_ref[...] * inv_len                       # (B, D)
        o_ref[...] = jnp.dot(pooled.astype(jnp.bfloat16), w_ref[...],
                             preferred_element_type=jnp.float32) + b_ref[...]


# ---------------------------------------------------------------------------
# pallas_call wrappers
# ---------------------------------------------------------------------------

def pallas_linear(x2d, w_bf16, b2d, *, row_block=512, out_dtype=jnp.float32):
    n, d_in = x2d.shape
    d_out = w_bf16.shape[1]
    rb = min(row_block, n)
    return pl.pallas_call(
        _linear_kernel,
        out_shape=jax.ShapeDtypeStruct((n, d_out), out_dtype),
        grid_spec=pltpu.PrefetchScalarGridSpec(
            num_scalar_prefetch=0,
            grid=(pl.cdiv(n, rb),),
            in_specs=[pl.BlockSpec((rb, d_in), lambda i: (i, 0)),
                      pl.BlockSpec((d_in, d_out), lambda i: (0, 0)),
                      pl.BlockSpec((1, d_out), lambda i: (0, 0))],
            out_specs=pl.BlockSpec((rb, d_out), lambda i: (i, 0))),
        compiler_params=_cp(("parallel",)),
    )(x2d, w_bf16, b2d)


def pallas_attention(qh, kh, vh, *, head_block=8, kv_block=512):
    # qh/kh/vh: (B*H, L, dk) bf16. Output: (B*H, Lq, dk) bf16.
    bh, lq, dk = qh.shape
    lk = kh.shape[1]
    hb = min(head_block, bh)
    kt = min(kv_block, lk)
    scale = 1.0 / math.sqrt(dk)
    return pl.pallas_call(
        functools.partial(_flash_attn_kernel, scale=scale, kv_len=lk, kv_tile=kt),
        out_shape=jax.ShapeDtypeStruct((bh, lq, dk), jnp.bfloat16),
        grid_spec=pltpu.PrefetchScalarGridSpec(
            num_scalar_prefetch=0,
            grid=(pl.cdiv(bh, hb), pl.cdiv(lk, kt)),
            in_specs=[pl.BlockSpec((hb, lq, dk), lambda h, k: (h, 0, 0)),
                      pl.BlockSpec((hb, kt, dk), lambda h, k: (h, k, 0)),
                      pl.BlockSpec((hb, kt, dk), lambda h, k: (h, k, 0))],
            out_specs=pl.BlockSpec((hb, lq, dk), lambda h, k: (h, 0, 0)),
            scratch_shapes=[pltpu.VMEM((hb, lq, 1), jnp.float32),
                            pltpu.VMEM((hb, lq, 1), jnp.float32),
                            pltpu.VMEM((hb, lq, dk), jnp.float32)]),
        compiler_params=_cp(("parallel", "arbitrary")),
    )(qh, kh, vh)


def pallas_attn_out_norm(ctx2d, res2d, w_o, b_o, gamma, beta, *,
                         row_block=512, eps=1e-5):
    n, d = res2d.shape
    rb = min(row_block, n)
    return pl.pallas_call(
        functools.partial(_attn_out_norm_kernel, eps=eps),
        out_shape=jax.ShapeDtypeStruct((n, d), jnp.float32),
        grid_spec=pltpu.PrefetchScalarGridSpec(
            num_scalar_prefetch=0,
            grid=(pl.cdiv(n, rb),),
            in_specs=[pl.BlockSpec((rb, d), lambda i: (i, 0)),
                      pl.BlockSpec((rb, d), lambda i: (i, 0)),
                      pl.BlockSpec((d, d), lambda i: (0, 0)),
                      pl.BlockSpec((1, d), lambda i: (0, 0)),
                      pl.BlockSpec((1, d), lambda i: (0, 0)),
                      pl.BlockSpec((1, d), lambda i: (0, 0))],
            out_specs=pl.BlockSpec((rb, d), lambda i: (i, 0))),
        compiler_params=_cp(("parallel",)),
    )(ctx2d, res2d, w_o, b_o, gamma, beta)


def pallas_layer_epilogue(ctx2d, res2d, p, *, row_block=512, eps=1e-5):
    n, d = res2d.shape
    d_ff = p['w_ff1'].shape[1]
    rb = min(row_block, n)
    return pl.pallas_call(
        functools.partial(_layer_epilogue_kernel, eps=eps),
        out_shape=jax.ShapeDtypeStruct((n, d), jnp.float32),
        grid_spec=pltpu.PrefetchScalarGridSpec(
            num_scalar_prefetch=0,
            grid=(pl.cdiv(n, rb),),
            in_specs=[pl.BlockSpec((rb, d), lambda i: (i, 0)),      # ctx (bf16)
                      pl.BlockSpec((rb, d), lambda i: (i, 0)),      # residual (f32)
                      pl.BlockSpec((d, d), lambda i: (0, 0)),       # Wo
                      pl.BlockSpec((1, d), lambda i: (0, 0)),       # bo
                      pl.BlockSpec((1, d), lambda i: (0, 0)),       # g1
                      pl.BlockSpec((1, d), lambda i: (0, 0)),       # be1
                      pl.BlockSpec((d, d_ff), lambda i: (0, 0)),    # W1
                      pl.BlockSpec((1, d_ff), lambda i: (0, 0)),    # b1
                      pl.BlockSpec((d_ff, d), lambda i: (0, 0)),    # W2
                      pl.BlockSpec((1, d), lambda i: (0, 0)),       # b2
                      pl.BlockSpec((1, d), lambda i: (0, 0)),       # g2
                      pl.BlockSpec((1, d), lambda i: (0, 0))],      # be2
            out_specs=pl.BlockSpec((rb, d), lambda i: (i, 0))),
        compiler_params=_cp(("parallel",)),
    )(ctx2d, res2d, p['w_o'], p['b_o'], p['g1'], p['be1'],
      p['w_ff1'], p['b_ff1'], p['w_ff2'], p['b_ff2'], p['g2'], p['be2'])


def pallas_pool_head(x3d, w_heads, b_heads, *, seq_block=512):
    b, l, d = x3d.shape
    d_out = w_heads.shape[1]
    lt = min(seq_block, l)
    return pl.pallas_call(
        functools.partial(_pool_head_kernel, inv_len=1.0 / l, seq_len=l, seq_tile=lt),
        out_shape=jax.ShapeDtypeStruct((b, d_out), jnp.float32),
        grid_spec=pltpu.PrefetchScalarGridSpec(
            num_scalar_prefetch=0,
            grid=(pl.cdiv(l, lt),),
            in_specs=[pl.BlockSpec((b, lt, d), lambda t: (0, t, 0)),
                      pl.BlockSpec((d, d_out), lambda t: (0, 0)),
                      pl.BlockSpec((1, d_out), lambda t: (0, 0))],
            out_specs=pl.BlockSpec((b, d_out), lambda t: (0, 0)),
            scratch_shapes=[pltpu.VMEM((b, d), jnp.float32)]),
        compiler_params=_cp(("arbitrary",)),
    )(x3d, w_heads, b_heads)


# ---------------------------------------------------------------------------
# Wrapper-side layout plumbing + module glue (plain JAX)
# ---------------------------------------------------------------------------

def apply_rope_jax(x):
    """Matches apply_rope() from the PyTorch module (done in the wrapper)."""
    bsz, seqlen, dim = x.shape
    if dim == 0:
        return x
    if dim % 2 != 0:
        x = jnp.concatenate([x, jnp.zeros((bsz, seqlen, 1), x.dtype)], axis=-1)
        dim_p = dim + 1
    else:
        dim_p = dim
    half = dim_p // 2
    freq_seq = jnp.arange(half, dtype=jnp.float32)
    inv_freq = 1.0 / (10000.0 ** (freq_seq / half))
    pos = jnp.arange(seqlen, dtype=jnp.float32)
    sinusoid = jnp.einsum('i,j->ij', pos, inv_freq)
    sin = jnp.sin(sinusoid)[None, :, :]
    cos = jnp.cos(sinusoid)[None, :, :]
    x1, x2 = x[..., :half], x[..., half:]
    out = jnp.concatenate([x1 * cos - x2 * sin, x1 * sin + x2 * cos], axis=-1)
    if dim % 2 != 0:
        out = out[..., :dim]
    return out


def _split_heads(x2d, b, l, h, dk):
    # (B*L, H*dk) -> (B*H, L, dk): bf16 layout plumbing outside the kernels.
    return x2d.reshape(b, l, h, dk).transpose(0, 2, 1, 3).reshape(b * h, l, dk)


def _merge_heads(ctx, b, l, h, dk):
    # (B*H, L, dk) -> (B*L, H*dk), bf16.
    return ctx.reshape(b, h, l, dk).transpose(0, 2, 1, 3).reshape(b * l, h * dk)


def encoder_forward(prep, svg_matrix, pixel_embedding, *, num_heads, latent_dim):
    b, ls, _ = svg_matrix.shape
    lpx = pixel_embedding.shape[1]
    d = prep['svg_proj'][0].shape[1]
    dk = d // num_heads

    # TODO(synk): embedding-table gathers + RoPE table construction stay in the JAX
    # wrapper (cheap prep; no clean Pallas path for tiny-table gathers).
    elem_ids = svg_matrix[:, :, 0].astype(jnp.int32)
    cmd_ids = svg_matrix[:, :, 1].astype(jnp.int32)
    cont = svg_matrix[:, :, 2:].astype(jnp.float32)
    svg_feat = jnp.concatenate([jnp.take(prep['elem_emb'], elem_ids, axis=0),
                                jnp.take(prep['cmd_emb'], cmd_ids, axis=0),
                                cont], axis=-1)
    svg_rope = apply_rope_jax(svg_feat)

    svg_proj = pallas_linear(svg_rope.reshape(b * ls, -1), *prep['svg_proj'])
    pix_proj = pallas_linear(pixel_embedding.reshape(b * lpx, -1).astype(jnp.float32),
                             *prep['pix_proj'])

    # Cross-attention (query = svg, key/value = pixel); fused [Wk|Wv] projection.
    c = prep['cross']
    q = pallas_linear(svg_proj, c['w_q'], c['b_q'], out_dtype=jnp.bfloat16)
    kv = pallas_linear(pix_proj, c['w_kv'], c['b_kv'], out_dtype=jnp.bfloat16)
    qh = _split_heads(q, b, ls, num_heads, dk)
    kh = _split_heads(kv[:, :d], b, lpx, num_heads, dk)
    vh = _split_heads(kv[:, d:], b, lpx, num_heads, dk)
    ctx2d = _merge_heads(pallas_attention(qh, kh, vh), b, ls, num_heads, dk)
    g, be = prep['cross_norm']
    x = pallas_attn_out_norm(ctx2d, svg_proj, c['w_o'], c['b_o'], g, be)

    # Self-attention transformer layers; fused [Wq|Wk|Wv] projection and fused
    # out-proj + LN1 + FFN + LN2 epilogue.
    for lyr in prep['layers']:
        qkv = pallas_linear(x, lyr['w_qkv'], lyr['b_qkv'], out_dtype=jnp.bfloat16)
        qh = _split_heads(qkv[:, :d], b, ls, num_heads, dk)
        kh = _split_heads(qkv[:, d:2 * d], b, ls, num_heads, dk)
        vh = _split_heads(qkv[:, 2 * d:], b, ls, num_heads, dk)
        ctx2d = _merge_heads(pallas_attention(qh, kh, vh), b, ls, num_heads, dk)
        x = pallas_layer_epilogue(ctx2d, x, lyr)

    mu_logvar = pallas_pool_head(x.reshape(b, ls, d), *prep['heads'])
    return mu_logvar[:, :latent_dim], mu_logvar[:, latent_dim:]


# ---------------------------------------------------------------------------
# Parameter init (PyTorch-default-style), bf16 prep, pure-JAX f32 reference
# ---------------------------------------------------------------------------

def _init_linear(key, fan_in, fan_out):
    kw, kb = jax.random.split(key)
    bound = 1.0 / math.sqrt(fan_in)
    w = jax.random.uniform(kw, (fan_in, fan_out), jnp.float32, -bound, bound)
    b = jax.random.uniform(kb, (fan_out,), jnp.float32, -bound, bound)
    return w, b


def init_params(key, *, num_element_types, num_command_types, element_embed_dim,
                command_embed_dim, num_other_continuous_svg_features,
                pixel_feature_dim, d_model, num_layers, latent_dim,
                element_padding_idx=0, command_padding_idx=0):
    keys = jax.random.split(key, 7 + num_layers)
    elem_emb = jax.random.normal(keys[0], (num_element_types, element_embed_dim),
                                 jnp.float32).at[element_padding_idx].set(0.0)
    cmd_emb = jax.random.normal(keys[1], (num_command_types, command_embed_dim),
                                jnp.float32).at[command_padding_idx].set(0.0)

    svg_in_dim = element_embed_dim + command_embed_dim + num_other_continuous_svg_features
    svg_proj = _init_linear(keys[2], svg_in_dim, d_model)
    pix_proj = _init_linear(keys[3], pixel_feature_dim, d_model)

    kq, kkv, ko = jax.random.split(keys[4], 3)
    wq, bq = _init_linear(kq, d_model, d_model)
    wkv, bkv = _init_linear(kkv, d_model, 2 * d_model)          # fused [Wk | Wv]
    wo, bo = _init_linear(ko, d_model, d_model)
    cross = dict(w_q=wq, b_q=bq, w_kv=wkv, b_kv=bkv, w_o=wo, b_o=bo)
    cross_norm = (jnp.ones((d_model,), jnp.float32), jnp.zeros((d_model,), jnp.float32))

    layers = []
    for li in range(num_layers):
        k1, k2, k3, k4 = jax.random.split(keys[5 + li], 4)
        w_qkv, b_qkv = _init_linear(k1, d_model, 3 * d_model)   # fused [Wq|Wk|Wv]
        w_o, b_o = _init_linear(k2, d_model, d_model)
        w_ff1, b_ff1 = _init_linear(k3, d_model, 4 * d_model)
        w_ff2, b_ff2 = _init_linear(k4, 4 * d_model, d_model)
        layers.append(dict(
            w_qkv=w_qkv, b_qkv=b_qkv, w_o=w_o, b_o=b_o,
            w_ff1=w_ff1, b_ff1=b_ff1, w_ff2=w_ff2, b_ff2=b_ff2,
            g1=jnp.ones((d_model,), jnp.float32), be1=jnp.zeros((d_model,), jnp.float32),
            g2=jnp.ones((d_model,), jnp.float32), be2=jnp.zeros((d_model,), jnp.float32)))

    heads = _init_linear(keys[5 + num_layers], d_model, 2 * latent_dim)  # fused [fc_mu | fc_var]

    return dict(elem_emb=elem_emb, cmd_emb=cmd_emb, svg_proj=svg_proj,
                pix_proj=pix_proj, cross=cross, cross_norm=cross_norm,
                layers=layers, heads=heads)


def prepare_params(params):
    """One-time host-side prep: weights -> bf16, biases / LN params -> (1, d) f32."""
    def w(x):
        return x.astype(jnp.bfloat16)

    def v(x):
        return x.reshape(1, -1).astype(jnp.float32)

    c = params['cross']
    cross = dict(w_q=w(c['w_q']), b_q=v(c['b_q']),
                 w_kv=w(c['w_kv']), b_kv=v(c['b_kv']),
                 w_o=w(c['w_o']), b_o=v(c['b_o']))
    layers = [dict(w_qkv=w(p['w_qkv']), b_qkv=v(p['b_qkv']),
                   w_o=w(p['w_o']), b_o=v(p['b_o']),
                   w_ff1=w(p['w_ff1']), b_ff1=v(p['b_ff1']),
                   w_ff2=w(p['w_ff2']), b_ff2=v(p['b_ff2']),
                   g1=v(p['g1']), be1=v(p['be1']),
                   g2=v(p['g2']), be2=v(p['be2']))
              for p in params['layers']]
    return dict(
        elem_emb=params['elem_emb'], cmd_emb=params['cmd_emb'],
        svg_proj=(w(params['svg_proj'][0]), v(params['svg_proj'][1])),
        pix_proj=(w(params['pix_proj'][0]), v(params['pix_proj'][1])),
        cross=cross,
        cross_norm=(v(params['cross_norm'][0]), v(params['cross_norm'][1])),
        layers=layers,
        heads=(w(params['heads'][0]), v(params['heads'][1])))


def _ref_layernorm(x, g, b, eps=1e-5):
    mu = jnp.mean(x, axis=-1, keepdims=True)
    var = jnp.mean((x - mu) ** 2, axis=-1, keepdims=True)
    return (x - mu) / jnp.sqrt(var + eps) * g + b


def _ref_mha(q_in, k_in, v_in, wq, bq, wk, bk, wv, bv, wo, bo, num_heads):
    b, lq, d = q_in.shape
    dk = d // num_heads
    q, k, v = q_in @ wq + bq, k_in @ wk + bk, v_in @ wv + bv

    def split(x):
        return x.reshape(b, -1, num_heads, dk).transpose(0, 2, 1, 3)

    qh, kh, vh = split(q), split(k), split(v)
    s = jnp.einsum('bhqd,bhkd->bhqk', qh, kh) / math.sqrt(dk)
    a = jax.nn.softmax(s, axis=-1)
    ctx = jnp.einsum('bhqk,bhkd->bhqd', a, vh).transpose(0, 2, 1, 3).reshape(b, lq, d)
    return ctx @ wo + bo


def encoder_reference(params, svg_matrix, pixel_embedding, num_heads, latent_dim):
    elem_ids = svg_matrix[:, :, 0].astype(jnp.int32)
    cmd_ids = svg_matrix[:, :, 1].astype(jnp.int32)
    cont = svg_matrix[:, :, 2:].astype(jnp.float32)
    svg_feat = jnp.concatenate([params['elem_emb'][elem_ids],
                                params['cmd_emb'][cmd_ids], cont], axis=-1)
    svg_rope = apply_rope_jax(svg_feat)
    w, bb = params['svg_proj']
    svg_p = svg_rope @ w + bb
    w, bb = params['pix_proj']
    pix_p = pixel_embedding @ w + bb
    d = svg_p.shape[-1]

    c = params['cross']
    attn = _ref_mha(svg_p, pix_p, pix_p, c['w_q'], c['b_q'],
                    c['w_kv'][:, :d], c['b_kv'][:d],
                    c['w_kv'][:, d:], c['b_kv'][d:],
                    c['w_o'], c['b_o'], num_heads)
    g, be = params['cross_norm']
    x = _ref_layernorm(svg_p + attn, g, be)

    for lp in params['layers']:
        attn = _ref_mha(x, x, x,
                        lp['w_qkv'][:, :d], lp['b_qkv'][:d],
                        lp['w_qkv'][:, d:2 * d], lp['b_qkv'][d:2 * d],
                        lp['w_qkv'][:, 2 * d:], lp['b_qkv'][2 * d:],
                        lp['w_o'], lp['b_o'], num_heads)
        x = _ref_layernorm(x + attn, lp['g1'], lp['be1'])
        h = jnp.maximum(x @ lp['w_ff1'] + lp['b_ff1'], 0.0)
        x = _ref_layernorm(x + h @ lp['w_ff2'] + lp['b_ff2'], lp['g2'], lp['be2'])

    pooled = jnp.mean(x, axis=1)
    wh, bh = params['heads']
    out = pooled @ wh + bh
    return out[:, :latent_dim], out[:, latent_dim:]


# ---------------------------------------------------------------------------
# Self-test
# ---------------------------------------------------------------------------

if __name__ == "__main__":
    # Small shapes consistent with the module.
    B, L_SVG, L_PIX = 2, 8, 8
    D_MODEL, NUM_HEADS, NUM_LAYERS, LATENT = 32, 4, 2, 16
    NUM_ELEM_TYPES, NUM_CMD_TYPES = 10, 6
    ELEM_EMB_DIM, CMD_EMB_DIM, NUM_OTHER_CONT = 8, 8, 6
    PIXEL_FEATURE_DIM = 24

    root = jax.random.PRNGKey(0)
    k_data, k_param = jax.random.split(root)
    k_e, k_c, k_cont, k_pix = jax.random.split(k_data, 4)

    elem_ids = jax.random.randint(k_e, (B, L_SVG), 0, NUM_ELEM_TYPES)
    cmd_ids = jax.random.randint(k_c, (B, L_SVG), 0, NUM_CMD_TYPES)
    cont = jax.random.normal(k_cont, (B, L_SVG, NUM_OTHER_CONT), jnp.float32)
    svg_matrix = jnp.concatenate(
        [elem_ids[..., None].astype(jnp.float32),
         cmd_ids[..., None].astype(jnp.float32), cont], axis=-1)            # (B, L, 8)
    pixel_embedding = jax.random.normal(k_pix, (B, L_PIX, PIXEL_FEATURE_DIM), jnp.float32)

    params = init_params(
        k_param,
        num_element_types=NUM_ELEM_TYPES, num_command_types=NUM_CMD_TYPES,
        element_embed_dim=ELEM_EMB_DIM, command_embed_dim=CMD_EMB_DIM,
        num_other_continuous_svg_features=NUM_OTHER_CONT,
        pixel_feature_dim=PIXEL_FEATURE_DIM, d_model=D_MODEL,
        num_layers=NUM_LAYERS, latent_dim=LATENT)
    prep = prepare_params(params)        # bf16 weights stored once (no per-forward converts)

    fwd = jax.jit(functools.partial(encoder_forward,
                                    num_heads=NUM_HEADS, latent_dim=LATENT))
    mu, log_var = jax.block_until_ready(fwd(prep, svg_matrix, pixel_embedding))

    mu_ref, lv_ref = encoder_reference(params, svg_matrix, pixel_embedding,
                                       NUM_HEADS, LATENT)

    assert mu.shape == (B, LATENT) and log_var.shape == (B, LATENT)
    # bf16 weights/intermediates (f32 accumulation) + approx reciprocal => looser
    # tolerance than a pure-f32 comparison (~1e-2 absolute on O(1) activations).
    assert jnp.allclose(mu, mu_ref, atol=7.5e-2, rtol=7.5e-2), (
        f"mu max abs diff {float(jnp.max(jnp.abs(mu - mu_ref)))}")
    assert jnp.allclose(log_var, lv_ref, atol=7.5e-2, rtol=7.5e-2), (
        f"log_var max abs diff {float(jnp.max(jnp.abs(log_var - lv_ref)))}")

    print("KERNEL_OK")
</pallas_src>

<mosaic_0001>
module attributes {stable_mosaic.version = 11 : i64} {
  func.func @_linear_kernel(%arg0: i32, %arg1: memref<16x22xf32, #tpu.memory_space<vmem>>, %arg2: memref<22x32xbf16, #tpu.memory_space<vmem>>, %arg3: memref<1x32xf32, #tpu.memory_space<vmem>>, %arg4: memref<16x32xf32, #tpu.memory_space<vmem>>) attributes {dimension_semantics = [#tpu.dimension_semantics<parallel>], iteration_bounds = array<i64: 1>, scalar_prefetch = 0 : i64, scratch_operands = 0 : i64, tpu.core_type = #tpu.core_type<tc>, window_params = [{transform_indices = @transform_0, window_bounds = array<i64: 16, 22>}, {pipeline_mode = #tpu.pipeline_mode<synchronous>, transform_indices = @transform_1, window_bounds = array<i64: 22, 32>}, {pipeline_mode = #tpu.pipeline_mode<synchronous>, transform_indices = @transform_2, window_bounds = array<i64: 1, 32>}, {transform_indices = @transform_3, window_bounds = array<i64: 16, 32>}]} {
    %c0 = arith.constant 0 : index
    %c0_0 = arith.constant 0 : index
    %0 = vector.load %arg1[%c0, %c0_0] : memref<16x22xf32, #tpu.memory_space<vmem>>, vector<16x22xf32>
    %1 = arith.truncf %0 : vector<16x22xf32> to vector<16x22xbf16>
    %c0_1 = arith.constant 0 : index
    %c0_2 = arith.constant 0 : index
    %2 = vector.load %arg2[%c0_1, %c0_2] : memref<22x32xbf16, #tpu.memory_space<vmem>>, vector<22x32xbf16>
    %cst = arith.constant dense<0.000000e+00> : vector<16x32xf32>
    %3 = tpu.matmul %1, %2, %cst {dimension_numbers = #tpu.dot_dimension_numbers<[1], [0], [0], [1], [0, 0, 1, 1], [], []>} : vector<16x22xbf16>, vector<22x32xbf16>, vector<16x32xf32> -> vector<16x32xf32>
    %c0_3 = arith.constant 0 : index
    %c0_4 = arith.constant 0 : index
    %4 = vector.load %arg3[%c0_3, %c0_4] : memref<1x32xf32, #tpu.memory_space<vmem>>, vector<1x32xf32>
    %5 = vector.broadcast %4 : vector<1x32xf32> to vector<16x32xf32>
    %6 = arith.addf %3, %5 : vector<16x32xf32>
    %c0_5 = arith.constant 0 : index
    %c0_6 = arith.constant 0 : index
    %7 = vector.load %arg4[%c0_5, %c0_6] : memref<16x32xf32, #tpu.memory_space<vmem>>, vector<16x32xf32>
    tpu.vector_store %arg4[%c0_5, %c0_6], %6 {strides = array<i32>} : memref<16x32xf32, #tpu.memory_space<vmem>>, vector<16x32xf32>,
    return
  }
  func.func @transform_0(%arg0: i32) -> (i32, i32) {
    %c0_i32 = arith.constant 0 : i32
    %c0_i32_0 = arith.constant 0 : i32
    return %arg0, %c0_i32 : i32, i32
  }
  func.func @transform_1(%arg0: i32) -> (i32, i32) {
    %c0_i32 = arith.constant 0 : i32
    %c0_i32_0 = arith.constant 0 : i32
    %c0_i32_1 = arith.constant 0 : i32
    return %c0_i32, %c0_i32_0 : i32, i32
  }
  func.func @transform_2(%arg0: i32) -> (i32, i32) {
    %c0_i32 = arith.constant 0 : i32
    %c0_i32_0 = arith.constant 0 : i32
    %c0_i32_1 = arith.constant 0 : i32
    return %c0_i32, %c0_i32_0 : i32, i32
  }
  func.func @transform_3(%arg0: i32) -> (i32, i32) {
    %c0_i32 = arith.constant 0 : i32
    %c0_i32_0 = arith.constant 0 : i32
    return %arg0, %c0_i32 : i32, i32
  }
}

module attributes {stable_mosaic.version = 11 : i64} {
  func.func @_linear_kernel(%arg0: i32, %arg1: memref<16x32xf32, #tpu.memory_space<vmem>>, %arg2: memref<32x32xbf16, #tpu.memory_space<vmem>>, %arg3: memref<1x32xf32, #tpu.memory_space<vmem>>, %arg4: memref<16x32xbf16, #tpu.memory_space<vmem>>) attributes {dimension_semantics = [#tpu.dimension_semantics<parallel>], iteration_bounds = array<i64: 1>, scalar_prefetch = 0 : i64, scratch_operands = 0 : i64, tpu.core_type = #tpu.core_type<tc>, window_params = [{transform_indices = @transform_0, window_bounds = array<i64: 16, 32>}, {pipeline_mode = #tpu.pipeline_mode<synchronous>, transform_indices = @transform_1, window_bounds = array<i64: 32, 32>}, {pipeline_mode = #tpu.pipeline_mode<synchronous>, transform_indices = @transform_2, window_bounds = array<i64: 1, 32>}, {transform_indices = @transform_3, window_bounds = array<i64: 16, 32>}]} {
    %c0 = arith.constant 0 : index
    %c0_0 = arith.constant 0 : index
    %0 = vector.load %arg1[%c0, %c0_0] : memref<16x32xf32, #tpu.memory_space<vmem>>, vector<16x32xf32>
    %1 = arith.truncf %0 : vector<16x32xf32> to vector<16x32xbf16>
    %c0_1 = arith.constant 0 : index
    %c0_2 = arith.constant 0 : index
    %2 = vector.load %arg2[%c0_1, %c0_2] : memref<32x32xbf16, #tpu.memory_space<vmem>>, vector<32x32xbf16>
    %cst = arith.constant dense<0.000000e+00> : vector<16x32xf32>
    %3 = tpu.matmul %1, %2, %cst {dimension_numbers = #tpu.dot_dimension_numbers<[1], [0], [0], [1], [0, 0, 1, 1], [], []>} : vector<16x32xbf16>, vector<32x32xbf16>, vector<16x32xf32> -> vector<16x32xf32>
    %c0_3 = arith.constant 0 : index
    %c0_4 = arith.constant 0 : index
    %4 = vector.load %arg3[%c0_3, %c0_4] : memref<1x32xf32, #tpu.memory_space<vmem>>, vector<1x32xf32>
    %5 = vector.broadcast %4 : vector<1x32xf32> to vector<16x32xf32>
    %6 = arith.addf %3, %5 : vector<16x32xf32>
    %7 = arith.truncf %6 : vector<16x32xf32> to vector<16x32xbf16>
    %c0_5 = arith.constant 0 : index
    %c0_6 = arith.constant 0 : index
    %8 = vector.load %arg4[%c0_5, %c0_6] : memref<16x32xbf16, #tpu.memory_space<vmem>>, vector<16x32xbf16>
    tpu.vector_store %arg4[%c0_5, %c0_6], %7 {strides = array<i32>} : memref<16x32xbf16, #tpu.memory_space<vmem>>, vector<16x32xbf16>,
    return
  }
  func.func @transform_0(%arg0: i32) -> (i32, i32) {
    %c0_i32 = arith.constant 0 : i32
    %c0_i32_0 = arith.constant 0 : i32
    return %arg0, %c0_i32 : i32, i32
  }
  func.func @transform_1(%arg0: i32) -> (i32, i32) {
    %c0_i32 = arith.constant 0 : i32
    %c0_i32_0 = arith.constant 0 : i32
    %c0_i32_1 = arith.constant 0 : i32
    return %c0_i32, %c0_i32_0 : i32, i32
  }
  func.func @transform_2(%arg0: i32) -> (i32, i32) {
    %c0_i32 = arith.constant 0 : i32
    %c0_i32_0 = arith.constant 0 : i32
    %c0_i32_1 = arith.constant 0 : i32
    return %c0_i32, %c0_i32_0 : i32, i32
  }
  func.func @transform_3(%arg0: i32) -> (i32, i32) {
    %c0_i32 = arith.constant 0 : i32
    %c0_i32_0 = arith.constant 0 : i32
    return %arg0, %c0_i32 : i32, i32
  }
}

module attributes {stable_mosaic.version = 11 : i64} {
  func.func @_linear_kernel(%arg0: i32, %arg1: memref<16x24xf32, #tpu.memory_space<vmem>>, %arg2: memref<24x32xbf16, #tpu.memory_space<vmem>>, %arg3: memref<1x32xf32, #tpu.memory_space<vmem>>, %arg4: memref<16x32xf32, #tpu.memory_space<vmem>>) attributes {dimension_semantics = [#tpu.dimension_semantics<parallel>], iteration_bounds = array<i64: 1>, scalar_prefetch = 0 : i64, scratch_operands = 0 : i64, tpu.core_type = #tpu.core_type<tc>, window_params = [{transform_indices = @transform_0, window_bounds = array<i64: 16, 24>}, {pipeline_mode = #tpu.pipeline_mode<synchronous>, transform_indices = @transform_1, window_bounds = array<i64: 24, 32>}, {pipeline_mode = #tpu.pipeline_mode<synchronous>, transform_indices = @transform_2, window_bounds = array<i64: 1, 32>}, {transform_indices = @transform_3, window_bounds = array<i64: 16, 32>}]} {
    %c0 = arith.constant 0 : index
    %c0_0 = arith.constant 0 : index
    %0 = vector.load %arg1[%c0, %c0_0] : memref<16x24xf32, #tpu.memory_space<vmem>>, vector<16x24xf32>
    %1 = arith.truncf %0 : vector<16x24xf32> to vector<16x24xbf16>
    %c0_1 = arith.constant 0 : index
    %c0_2 = arith.constant 0 : index
    %2 = vector.load %arg2[%c0_1, %c0_2] : memref<24x32xbf16, #tpu.memory_space<vmem>>, vector<24x32xbf16>
    %cst = arith.constant dense<0.000000e+00> : vector<16x32xf32>
    %3 = tpu.matmul %1, %2, %cst {dimension_numbers = #tpu.dot_dimension_numbers<[1], [0], [0], [1], [0, 0, 1, 1], [], []>} : vector<16x24xbf16>, vector<24x32xbf16>, vector<16x32xf32> -> vector<16x32xf32>
    %c0_3 = arith.constant 0 : index
    %c0_4 = arith.constant 0 : index
    %4 = vector.load %arg3[%c0_3, %c0_4] : memref<1x32xf32, #tpu.memory_space<vmem>>, vector<1x32xf32>
    %5 = vector.broadcast %4 : vector<1x32xf32> to vector<16x32xf32>
    %6 = arith.addf %3, %5 : vector<16x32xf32>
    %c0_5 = arith.constant 0 : index
    %c0_6 = arith.constant 0 : index
    %7 = vector.load %arg4[%c0_5, %c0_6] : memref<16x32xf32, #tpu.memory_space<vmem>>, vector<16x32xf32>
    tpu.vector_store %arg4[%c0_5, %c0_6], %6 {strides = array<i32>} : memref<16x32xf32, #tpu.memory_space<vmem>>, vector<16x32xf32>,
    return
  }
  func.func @transform_0(%arg0: i32) -> (i32, i32) {
    %c0_i32 = arith.constant 0 : i32
    %c0_i32_0 = arith.constant 0 : i32
    return %arg0, %c0_i32 : i32, i32
  }
  func.func @transform_1(%arg0: i32) -> (i32, i32) {
    %c0_i32 = arith.constant 0 : i32
    %c0_i32_0 = arith.constant 0 : i32
    %c0_i32_1 = arith.constant 0 : i32
    return %c0_i32, %c0_i32_0 : i32, i32
  }
  func.func @transform_2(%arg0: i32) -> (i32, i32) {
    %c0_i32 = arith.constant 0 : i32
    %c0_i32_0 = arith.constant 0 : i32
    %c0_i32_1 = arith.constant 0 : i32
    return %c0_i32, %c0_i32_0 : i32, i32
  }
  func.func @transform_3(%arg0: i32) -> (i32, i32) {
    %c0_i32 = arith.constant 0 : i32
    %c0_i32_0 = arith.constant 0 : i32
    return %arg0, %c0_i32 : i32, i32
  }
}

module attributes {stable_mosaic.version = 11 : i64} {
  func.func @_linear_kernel(%arg0: i32, %arg1: memref<16x32xf32, #tpu.memory_space<vmem>>, %arg2: memref<32x64xbf16, #tpu.memory_space<vmem>>, %arg3: memref<1x64xf32, #tpu.memory_space<vmem>>, %arg4: memref<16x64xbf16, #tpu.memory_space<vmem>>) attributes {dimension_semantics = [#tpu.dimension_semantics<parallel>], iteration_bounds = array<i64: 1>, scalar_prefetch = 0 : i64, scratch_operands = 0 : i64, tpu.core_type = #tpu.core_type<tc>, window_params = [{transform_indices = @transform_0, window_bounds = array<i64: 16, 32>}, {pipeline_mode = #tpu.pipeline_mode<synchronous>, transform_indices = @transform_1, window_bounds = array<i64: 32, 64>}, {pipeline_mode = #tpu.pipeline_mode<synchronous>, transform_indices = @transform_2, window_bounds = array<i64: 1, 64>}, {transform_indices = @transform_3, window_bounds = array<i64: 16, 64>}]} {
    %c0 = arith.constant 0 : index
    %c0_0 = arith.constant 0 : index
    %0 = vector.load %arg1[%c0, %c0_0] : memref<16x32xf32, #tpu.memory_space<vmem>>, vector<16x32xf32>
    %1 = arith.truncf %0 : vector<16x32xf32> to vector<16x32xbf16>
    %c0_1 = arith.constant 0 : index
    %c0_2 = arith.constant 0 : index
    %2 = vector.load %arg2[%c0_1, %c0_2] : memref<32x64xbf16, #tpu.memory_space<vmem>>, vector<32x64xbf16>
    %cst = arith.constant dense<0.000000e+00> : vector<16x64xf32>
    %3 = tpu.matmul %1, %2, %cst {dimension_numbers = #tpu.dot_dimension_numbers<[1], [0], [0], [1], [0, 0, 1, 1], [], []>} : vector<16x32xbf16>, vector<32x64xbf16>, vector<16x64xf32> -> vector<16x64xf32>
    %c0_3 = arith.constant 0 : index
    %c0_4 = arith.constant 0 : index
    %4 = vector.load %arg3[%c0_3, %c0_4] : memref<1x64xf32, #tpu.memory_space<vmem>>, vector<1x64xf32>
    %5 = vector.broadcast %4 : vector<1x64xf32> to vector<16x64xf32>
    %6 = arith.addf %3, %5 : vector<16x64xf32>
    %7 = arith.truncf %6 : vector<16x64xf32> to vector<16x64xbf16>
    %c0_5 = arith.constant 0 : index
    %c0_6 = arith.constant 0 : index
    %8 = vector.load %arg4[%c0_5, %c0_6] : memref<16x64xbf16, #tpu.memory_space<vmem>>, vector<16x64xbf16>
    tpu.vector_store %arg4[%c0_5, %c0_6], %7 {strides = array<i32>} : memref<16x64xbf16, #tpu.memory_space<vmem>>, vector<16x64xbf16>,
    return
  }
  func.func @transform_0(%arg0: i32) -> (i32, i32) {
    %c0_i32 = arith.constant 0 : i32
    %c0_i32_0 = arith.constant 0 : i32
    return %arg0, %c0_i32 : i32, i32
  }
  func.func @transform_1(%arg0: i32) -> (i32, i32) {
    %c0_i32 = arith.constant 0 : i32
    %c0_i32_0 = arith.constant 0 : i32
    %c0_i32_1 = arith.constant 0 : i32
    return %c0_i32, %c0_i32_0 : i32, i32
  }
  func.func @transform_2(%arg0: i32) -> (i32, i32) {
    %c0_i32 = arith.constant 0 : i32
    %c0_i32_0 = arith.constant 0 : i32
    %c0_i32_1 = arith.constant 0 : i32
    return %c0_i32, %c0_i32_0 : i32, i32
  }
  func.func @transform_3(%arg0: i32) -> (i32, i32) {
    %c0_i32 = arith.constant 0 : i32
    %c0_i32_0 = arith.constant 0 : i32
    return %arg0, %c0_i32 : i32, i32
  }
}

module attributes {stable_mosaic.version = 11 : i64} {
  func.func @_attn_out_norm_kernel(%arg0: i32, %arg1: memref<16x32xbf16, #tpu.memory_space<vmem>>, %arg2: memref<16x32xf32, #tpu.memory_space<vmem>>, %arg3: memref<32x32xbf16, #tpu.memory_space<vmem>>, %arg4: memref<1x32xf32, #tpu.memory_space<vmem>>, %arg5: memref<1x32xf32, #tpu.memory_space<vmem>>, %arg6: memref<1x32xf32, #tpu.memory_space<vmem>>, %arg7: memref<16x32xf32, #tpu.memory_space<vmem>>) attributes {dimension_semantics = [#tpu.dimension_semantics<parallel>], iteration_bounds = array<i64: 1>, scalar_prefetch = 0 : i64, scratch_operands = 0 : i64, tpu.core_type = #tpu.core_type<tc>, window_params = [{transform_indices = @transform_0, window_bounds = array<i64: 16, 32>}, {transform_indices = @transform_1, window_bounds = array<i64: 16, 32>}, {pipeline_mode = #tpu.pipeline_mode<synchronous>, transform_indices = @transform_2, window_bounds = array<i64: 32, 32>}, {pipeline_mode = #tpu.pipeline_mode<synchronous>, transform_indices = @transform_3, window_bounds = array<i64: 1, 32>}, {pipeline_mode = #tpu.pipeline_mode<synchronous>, transform_indices = @transform_4, window_bounds = array<i64: 1, 32>}, {pipeline_mode = #tpu.pipeline_mode<synchronous>, transform_indices = @transform_5, window_bounds = array<i64: 1, 32>}, {transform_indices = @transform_6, window_bounds = array<i64: 16, 32>}]} {
    %c0 = arith.constant 0 : index
    %c0_0 = arith.constant 0 : index
    %0 = vector.load %arg1[%c0, %c0_0] : memref<16x32xbf16, #tpu.memory_space<vmem>>, vector<16x32xbf16>
    %c0_1 = arith.constant 0 : index
    %c0_2 = arith.constant 0 : index
    %1 = vector.load %arg3[%c0_1, %c0_2] : memref<32x32xbf16, #tpu.memory_space<vmem>>, vector<32x32xbf16>
    %cst = arith.constant dense<0.000000e+00> : vector<16x32xf32>
    %2 = tpu.matmul %0, %1, %cst {dimension_numbers = #tpu.dot_dimension_numbers<[1], [0], [0], [1], [0, 0, 1, 1], [], []>} : vector<16x32xbf16>, vector<32x32xbf16>, vector<16x32xf32> -> vector<16x32xf32>
    %c0_3 = arith.constant 0 : index
    %c0_4 = arith.constant 0 : index
    %3 = vector.load %arg4[%c0_3, %c0_4] : memref<1x32xf32, #tpu.memory_space<vmem>>, vector<1x32xf32>
    %4 = vector.broadcast %3 : vector<1x32xf32> to vector<16x32xf32>
    %5 = arith.addf %2, %4 : vector<16x32xf32>
    %c0_5 = arith.constant 0 : index
    %c0_6 = arith.constant 0 : index
    %6 = vector.load %arg2[%c0_5, %c0_6] : memref<16x32xf32, #tpu.memory_space<vmem>>, vector<16x32xf32>
    %7 = arith.addf %5, %6 : vector<16x32xf32>
    %c0_7 = arith.constant 0 : index
    %c0_8 = arith.constant 0 : index
    %8 = vector.load %arg5[%c0_7, %c0_8] : memref<1x32xf32, #tpu.memory_space<vmem>>, vector<1x32xf32>
    %c0_9 = arith.constant 0 : index
    %c0_10 = arith.constant 0 : index
    %9 = vector.load %arg6[%c0_9, %c0_10] : memref<1x32xf32, #tpu.memory_space<vmem>>, vector<1x32xf32>
    %cst_11 = arith.constant dense<0.000000e+00> : vector<16xf32>
    %10 = vector.multi_reduction <add>, %7, %cst_11 [1] : vector<16x32xf32> to vector<16xf32>
    %11 = vector.shape_cast %10 : vector<16xf32> to vector<16x1xf32>
    %cst_12 = arith.constant 3.200000e+01 : f32
    %12 = vector.broadcast %cst_12 : f32 to vector<16x1xf32>
    %13 = arith.divf %11, %12 : vector<16x1xf32>
    %14 = vector.broadcast %13 : vector<16x1xf32> to vector<16x32xf32>
    %15 = arith.subf %7, %14 : vector<16x32xf32>
    %16 = arith.mulf %15, %15 : vector<16x32xf32>
    %cst_13 = arith.constant dense<0.000000e+00> : vector<16xf32>
    %17 = vector.multi_reduction <add>, %16, %cst_13 [1] : vector<16x32xf32> to vector<16xf32>
    %18 = vector.shape_cast %17 : vector<16xf32> to vector<16x1xf32>
    %cst_14 = arith.constant 3.200000e+01 : f32
    %19 = vector.broadcast %cst_14 : f32 to vector<16x1xf32>
    %20 = arith.divf %18, %19 : vector<16x1xf32>
    %cst_15 = arith.constant 9.99999974E-6 : f32
    %21 = vector.broadcast %cst_15 : f32 to vector<16x1xf32>
    %22 = arith.addf %20, %21 : vector<16x1xf32>
    %23 = math.rsqrt %22 : vector<16x1xf32>
    %24 = vector.broadcast %23 : vector<16x1xf32> to vector<16x32xf32>
    %25 = arith.mulf %15, %24 : vector<16x32xf32>
    %26 = vector.broadcast %8 : vector<1x32xf32> to vector<16x32xf32>
    %27 = arith.mulf %25, %26 : vector<16x32xf32>
    %28 = vector.broadcast %9 : vector<1x32xf32> to vector<16x32xf32>
    %29 = arith.addf %27, %28 : vector<16x32xf32>
    %c0_16 = arith.constant 0 : index
    %c0_17 = arith.constant 0 : index
    %30 = vector.load %arg7[%c0_16, %c0_17] : memref<16x32xf32, #tpu.memory_space<vmem>>, vector<16x32xf32>
    tpu.vector_store %arg7[%c0_16, %c0_17], %29 {strides = array<i32>} : memref<16x32xf32, #tpu.memory_space<vmem>>, vector<16x32xf32>,
    return
  }
  func.func @transform_0(%arg0: i32) -> (i32, i32) {
    %c0_i32 = arith.constant 0 : i32
    %c0_i32_0 = arith.constant 0 : i32
    return %arg0, %c0_i32 : i32, i32
  }
  func.func @transform_1(%arg0: i32) -> (i32, i32) {
    %c0_i32 = arith.constant 0 : i32
    %c0_i32_0 = arith.constant 0 : i32
    return %arg0, %c0_i32 : i32, i32
  }
  func.func @transform_2(%arg0: i32) -> (i32, i32) {
    %c0_i32 = arith.constant 0 : i32
    %c0_i32_0 = arith.constant 0 : i32
    %c0_i32_1 = arith.constant 0 : i32
    return %c0_i32, %c0_i32_0 : i32, i32
  }
  func.func @transform_3(%arg0: i32) -> (i32, i32) {
    %c0_i32 = arith.constant 0 : i32
    %c0_i32_0 = arith.constant 0 : i32
    %c0_i32_1 = arith.constant 0 : i32
    return %c0_i32, %c0_i32_0 : i32, i32
  }
  func.func @transform_4(%arg0: i32) -> (i32, i32) {
    %c0_i32 = arith.constant 0 : i32
    %c0_i32_0 = arith.constant 0 : i32
    %c0_i32_1 = arith.constant 0 : i32
    return %c0_i32, %c0_i32_0 : i32, i32
  }
  func.func @transform_5(%arg0: i32) -> (i32, i32) {
    %c0_i32 = arith.constant 0 : i32
    %c0_i32_0 = arith.constant 0 : i32
    %c0_i32_1 = arith.constant 0 : i32
    return %c0_i32, %c0_i32_0 : i32, i32
  }
  func.func @transform_6(%arg0: i32) -> (i32, i32) {
    %c0_i32 = arith.constant 0 : i32
    %c0_i32_0 = arith.constant 0 : i32
    return %arg0, %c0_i32 : i32, i32
  }
}

module attributes {stable_mosaic.version = 11 : i64} {
  func.func @_flash_attn_kernel(%arg0: i32, %arg1: i32, %arg2: memref<8x8x8xbf16, #tpu.memory_space<vmem>>, %arg3: memref<8x8x8xbf16, #tpu.memory_space<vmem>>, %arg4: memref<8x8x8xbf16, #tpu.memory_space<vmem>>, %arg5: memref<8x8x8xbf16, #tpu.memory_space<vmem>>, %arg6: memref<8x8x1xf32, #tpu.memory_space<vmem>>, %arg7: memref<8x8x1xf32, #tpu.memory_space<vmem>>, %arg8: memref<8x8x8xf32, #tpu.memory_space<vmem>>) attributes {dimension_semantics = [#tpu.dimension_semantics<parallel>, #tpu.dimension_semantics<arbitrary>], iteration_bounds = array<i64: 1, 1>, scalar_prefetch = 0 : i64, scratch_operands = 3 : i64, tpu.core_type = #tpu.core_type<tc>, window_params = [{transform_indices = @transform_0, window_bounds = array<i64: 8, 8, 8>}, {transform_indices = @transform_1, window_bounds = array<i64: 8, 8, 8>}, {transform_indices = @transform_2, window_bounds = array<i64: 8, 8, 8>}, {transform_indices = @transform_3, window_bounds = array<i64: 8, 8, 8>}]} {
    %c0_i32 = arith.constant 0 : i32
    %0 = arith.cmpi eq, %arg1, %c0_i32 : i32
    %1 = arith.extui %0 : i1 to i32
    %c0_i32_0 = arith.constant 0 : i32
    %2 = arith.cmpi ne, %1, %c0_i32_0 : i32
    scf.if %2 {
      %cst_33 = arith.constant 0xFF800000 : f32
      %37 = vector.broadcast %cst_33 : f32 to vector<8x8x1xf32>
      %c0_34 = arith.constant 0 : index
      %c0_35 = arith.constant 0 : index
      %c0_36 = arith.constant 0 : index
      %38 = vector.load %arg6[%c0_34, %c0_35, %c0_36] : memref<8x8x1xf32, #tpu.memory_space<vmem>>, vector<8x8x1xf32>
      tpu.vector_store %arg6[%c0_34, %c0_35, %c0_36], %37 {strides = array<i32>} : memref<8x8x1xf32, #tpu.memory_space<vmem>>, vector<8x8x1xf32>,
      %cst_37 = arith.constant 0.000000e+00 : f32
      %39 = vector.broadcast %cst_37 : f32 to vector<8x8x1xf32>
      %c0_38 = arith.constant 0 : index
      %c0_39 = arith.constant 0 : index
      %c0_40 = arith.constant 0 : index
      %40 = vector.load %arg7[%c0_38, %c0_39, %c0_40] : memref<8x8x1xf32, #tpu.memory_space<vmem>>, vector<8x8x1xf32>
      tpu.vector_store %arg7[%c0_38, %c0_39, %c0_40], %39 {strides = array<i32>} : memref<8x8x1xf32, #tpu.memory_space<vmem>>, vector<8x8x1xf32>,
      %cst_41 = arith.constant 0.000000e+00 : f32
      %41 = vector.broadcast %cst_41 : f32 to vector<8x8x8xf32>
      %c0_42 = arith.constant 0 : index
      %c0_43 = arith.constant 0 : index
      %c0_44 = arith.constant 0 : index
      %42 = vector.load %arg8[%c0_42, %c0_43, %c0_44] : memref<8x8x8xf32, #tpu.memory_space<vmem>>, vector<8x8x8xf32>
      tpu.vector_store %arg8[%c0_42, %c0_43, %c0_44], %41 {strides = array<i32>} : memref<8x8x8xf32, #tpu.memory_space<vmem>>, vector<8x8x8xf32>,
    } else {
    }
    %c0 = arith.constant 0 : index
    %c0_1 = arith.constant 0 : index
    %c0_2 = arith.constant 0 : index
    %3 = vector.load %arg2[%c0, %c0_1, %c0_2] : memref<8x8x8xbf16, #tpu.memory_space<vmem>>, vector<8x8x8xbf16>
    %4 = arith.extf %3 : vector<8x8x8xbf16> to vector<8x8x8xf32>
    %cst = arith.constant 0.353553385 : f32
    %5 = vector.broadcast %cst : f32 to vector<8x8x8xf32>
    %6 = arith.mulf %4, %5 : vector<8x8x8xf32>
    %7 = arith.truncf %6 : vector<8x8x8xf32> to vector<8x8x8xbf16>
    %c0_3 = arith.constant 0 : index
    %c0_4 = arith.constant 0 : index
    %c0_5 = arith.constant 0 : index
    %8 = vector.load %arg3[%c0_3, %c0_4, %c0_5] : memref<8x8x8xbf16, #tpu.memory_space<vmem>>, vector<8x8x8xbf16>
    "tpu.trace_start"() <{level = 10 : i32, message = "bqd,bkd->bqk"}> : () -> ()
    %cst_6 = arith.constant dense<0.000000e+00> : vector<8x8x8xf32>
    %9 = tpu.matmul %7, %8, %cst_6 {dimension_numbers = #tpu.dot_dimension_numbers<[2], [2], [1], [1], [0, 0, 0, 1, 1, 1], [0], [0]>} : vector<8x8x8xbf16>, vector<8x8x8xbf16>, vector<8x8x8xf32> -> vector<8x8x8xf32>
    "tpu.trace_stop"() : () -> ()
    %c0_7 = arith.constant 0 : index
    %c0_8 = arith.constant 0 : index
    %c0_9 = arith.constant 0 : index
    %10 = vector.load %arg6[%c0_7, %c0_8, %c0_9] : memref<8x8x1xf32, #tpu.memory_space<vmem>>, vector<8x8x1xf32>
    %cst_10 = arith.constant dense<0xFF800000> : vector<8x8xf32>
    %11 = vector.multi_reduction <maximumf>, %9, %cst_10 [2] : vector<8x8x8xf32> to vector<8x8xf32>
    %12 = vector.shape_cast %11 : vector<8x8xf32> to vector<8x8x1xf32>
    %13 = arith.maximumf %10, %12 : vector<8x8x1xf32>
    %14 = arith.subf %10, %13 : vector<8x8x1xf32>
    %15 = math.exp %14 : vector<8x8x1xf32>
    %16 = vector.broadcast %13 : vector<8x8x1xf32> to vector<8x8x8xf32>
    %17 = arith.subf %9, %16 : vector<8x8x8xf32>
    %18 = math.exp %17 : vector<8x8x8xf32>
    %c0_11 = arith.constant 0 : index
    %c0_12 = arith.constant 0 : index
    %c0_13 = arith.constant 0 : index
    %19 = vector.load %arg7[%c0_11, %c0_12, %c0_13] : memref<8x8x1xf32, #tpu.memory_space<vmem>>, vector<8x8x1xf32>
    %20 = arith.mulf %15, %19 : vector<8x8x1xf32>
    %cst_14 = arith.constant dense<0.000000e+00> : vector<8x8xf32>
    %21 = vector.multi_reduction <add>, %18, %cst_14 [2] : vector<8x8x8xf32> to vector<8x8xf32>
    %22 = vector.shape_cast %21 : vector<8x8xf32> to vector<8x8x1xf32>
    %23 = arith.addf %20, %22 : vector<8x8x1xf32>
    %c0_15 = arith.constant 0 : index
    %c0_16 = arith.constant 0 : index
    %c0_17 = arith.constant 0 : index
    %24 = vector.load %arg7[%c0_15, %c0_16, %c0_17] : memref<8x8x1xf32, #tpu.memory_space<vmem>>, vector<8x8x1xf32>
    tpu.vector_store %arg7[%c0_15, %c0_16, %c0_17], %23 {strides = array<i32>} : memref<8x8x1xf32, #tpu.memory_space<vmem>>, vector<8x8x1xf32>,
    %c0_18 = arith.constant 0 : index
    %c0_19 = arith.constant 0 : index
    %c0_20 = arith.constant 0 : index
    %25 = vector.load %arg8[%c0_18, %c0_19, %c0_20] : memref<8x8x8xf32, #tpu.memory_space<vmem>>, vector<8x8x8xf32>
    %26 = vector.broadcast %15 : vector<8x8x1xf32> to vector<8x8x8xf32>
    %27 = arith.mulf %26, %25 : vector<8x8x8xf32>
    %28 = arith.truncf %18 : vector<8x8x8xf32> to vector<8x8x8xbf16>
    %c0_21 = arith.constant 0 : index
    %c0_22 = arith.constant 0 : index
    %c0_23 = arith.constant 0 : index
    %29 = vector.load %arg4[%c0_21, %c0_22, %c0_23] : memref<8x8x8xbf16, #tpu.memory_space<vmem>>, vector<8x8x8xbf16>
    "tpu.trace_start"() <{level = 10 : i32, message = "bqk,bkd->bqd"}> : () -> ()
    %cst_24 = arith.constant dense<0.000000e+00> : vector<8x8x8xf32>
    %30 = tpu.matmul %28, %29, %cst_24 {dimension_numbers = #tpu.dot_dimension_numbers<[2], [1], [1], [2], [0, 0, 0, 1, 1, 2], [0], [0]>} : vector<8x8x8xbf16>, vector<8x8x8xbf16>, vector<8x8x8xf32> -> vector<8x8x8xf32>
    "tpu.trace_stop"() : () -> ()
    %31 = arith.addf %27, %30 : vector<8x8x8xf32>
    %c0_25 = arith.constant 0 : index
    %c0_26 = arith.constant 0 : index
    %c0_27 = arith.constant 0 : index
    %32 = vector.load %arg8[%c0_25, %c0_26, %c0_27] : memref<8x8x8xf32, #tpu.memory_space<vmem>>, vector<8x8x8xf32>
    tpu.vector_store %arg8[%c0_25, %c0_26, %c0_27], %31 {strides = array<i32>} : memref<8x8x8xf32, #tpu.memory_space<vmem>>, vector<8x8x8xf32>,
    %c0_28 = arith.constant 0 : index
    %c0_29 = arith.constant 0 : index
    %c0_30 = arith.constant 0 : index
    %33 = vector.load %arg6[%c0_28, %c0_29, %c0_30] : memref<8x8x1xf32, #tpu.memory_space<vmem>>, vector<8x8x1xf32>
    tpu.vector_store %arg6[%c0_28, %c0_29, %c0_30], %13 {strides = array<i32>} : memref<8x8x1xf32, #tpu.memory_space<vmem>>, vector<8x8x1xf32>,
    %c0_i32_31 = arith.constant 0 : i32
    %34 = arith.cmpi eq, %arg1, %c0_i32_31 : i32
    %35 = arith.extui %34 : i1 to i32
    %c0_i32_32 = arith.constant 0 : i32
    %36 = arith.cmpi ne, %35, %c0_i32_32 : i32
    scf.if %36 {
      %c0_33 = arith.constant 0 : index
      %c0_34 = arith.constant 0 : index
      %c0_35 = arith.constant 0 : index
      %37 = vector.load %arg8[%c0_33, %c0_34, %c0_35] : memref<8x8x8xf32, #tpu.memory_space<vmem>>, vector<8x8x8xf32>
      %c0_36 = arith.constant 0 : index
      %c0_37 = arith.constant 0 : index
      %c0_38 = arith.constant 0 : index
      %38 = vector.load %arg7[%c0_36, %c0_37, %c0_38] : memref<8x8x1xf32, #tpu.memory_space<vmem>>, vector<8x8x1xf32>
      %39 = tpu.reciprocal %38 {approx = true} : vector<8x8x1xf32> -> vector<8x8x1xf32>
      %40 = vector.broadcast %39 : vector<8x8x1xf32> to vector<8x8x8xf32>
      %41 = arith.mulf %37, %40 : vector<8x8x8xf32>
      %42 = arith.truncf %41 : vector<8x8x8xf32> to vector<8x8x8xbf16>
      %c0_39 = arith.constant 0 : index
      %c0_40 = arith.constant 0 : index
      %c0_41 = arith.constant 0 : index
      %43 = vector.load %arg5[%c0_39, %c0_40, %c0_41] : memref<8x8x8xbf16, #tpu.memory_space<vmem>>, vector<8x8x8xbf16>
      tpu.vector_store %arg5[%c0_39, %c0_40, %c0_41], %42 {strides = array<i32>} : memref<8x8x8xbf16, #tpu.memory_space<vmem>>, vector<8x8x8xbf16>,
    } else {
    }
    return
  }
  func.func @transform_0(%arg0: i32, %arg1: i32) -> (i32, i32, i32) {
    %c0_i32 = arith.constant 0 : i32
    %c0_i32_0 = arith.constant 0 : i32
    %c0_i32_1 = arith.constant 0 : i32
    return %arg0, %c0_i32, %c0_i32_0 : i32, i32, i32
  }
  func.func @transform_1(%arg0: i32, %arg1: i32) -> (i32, i32, i32) {
    %c0_i32 = arith.constant 0 : i32
    %c0_i32_0 = arith.constant 0 : i32
    return %arg0, %arg1, %c0_i32 : i32, i32, i32
  }
  func.func @transform_2(%arg0: i32, %arg1: i32) -> (i32, i32, i32) {
    %c0_i32 = arith.constant 0 : i32
    %c0_i32_0 = arith.constant 0 : i32
    return %arg0, %arg1, %c0_i32 : i32, i32, i32
  }
  func.func @transform_3(%arg0: i32, %arg1: i32) -> (i32, i32, i32) {
    %c0_i32 = arith.constant 0 : i32
    %c0_i32_0 = arith.constant 0 : i32
    %c0_i32_1 = arith.constant 0 : i32
    return %arg0, %c0_i32, %c0_i32_0 : i32, i32, i32
  }
}

module attributes {stable_mosaic.version = 11 : i64} {
  func.func @_linear_kernel(%arg0: i32, %arg1: memref<16x32xf32, #tpu.memory_space<vmem>>, %arg2: memref<32x96xbf16, #tpu.memory_space<vmem>>, %arg3: memref<1x96xf32, #tpu.memory_space<vmem>>, %arg4: memref<16x96xbf16, #tpu.memory_space<vmem>>) attributes {dimension_semantics = [#tpu.dimension_semantics<parallel>], iteration_bounds = array<i64: 1>, scalar_prefetch = 0 : i64, scratch_operands = 0 : i64, tpu.core_type = #tpu.core_type<tc>, window_params = [{transform_indices = @transform_0, window_bounds = array<i64: 16, 32>}, {pipeline_mode = #tpu.pipeline_mode<synchronous>, transform_indices = @transform_1, window_bounds = array<i64: 32, 96>}, {pipeline_mode = #tpu.pipeline_mode<synchronous>, transform_indices = @transform_2, window_bounds = array<i64: 1, 96>}, {transform_indices = @transform_3, window_bounds = array<i64: 16, 96>}]} {
    %c0 = arith.constant 0 : index
    %c0_0 = arith.constant 0 : index
    %0 = vector.load %arg1[%c0, %c0_0] : memref<16x32xf32, #tpu.memory_space<vmem>>, vector<16x32xf32>
    %1 = arith.truncf %0 : vector<16x32xf32> to vector<16x32xbf16>
    %c0_1 = arith.constant 0 : index
    %c0_2 = arith.constant 0 : index
    %2 = vector.load %arg2[%c0_1, %c0_2] : memref<32x96xbf16, #tpu.memory_space<vmem>>, vector<32x96xbf16>
    %cst = arith.constant dense<0.000000e+00> : vector<16x96xf32>
    %3 = tpu.matmul %1, %2, %cst {dimension_numbers = #tpu.dot_dimension_numbers<[1], [0], [0], [1], [0, 0, 1, 1], [], []>} : vector<16x32xbf16>, vector<32x96xbf16>, vector<16x96xf32> -> vector<16x96xf32>
    %c0_3 = arith.constant 0 : index
    %c0_4 = arith.constant 0 : index
    %4 = vector.load %arg3[%c0_3, %c0_4] : memref<1x96xf32, #tpu.memory_space<vmem>>, vector<1x96xf32>
    %5 = vector.broadcast %4 : vector<1x96xf32> to vector<16x96xf32>
    %6 = arith.addf %3, %5 : vector<16x96xf32>
    %7 = arith.truncf %6 : vector<16x96xf32> to vector<16x96xbf16>
    %c0_5 = arith.constant 0 : index
    %c0_6 = arith.constant 0 : index
    %8 = vector.load %arg4[%c0_5, %c0_6] : memref<16x96xbf16, #tpu.memory_space<vmem>>, vector<16x96xbf16>
    tpu.vector_store %arg4[%c0_5, %c0_6], %7 {strides = array<i32>} : memref<16x96xbf16, #tpu.memory_space<vmem>>, vector<16x96xbf16>,
    return
  }
  func.func @transform_0(%arg0: i32) -> (i32, i32) {
    %c0_i32 = arith.constant 0 : i32
    %c0_i32_0 = arith.constant 0 : i32
    return %arg0, %c0_i32 : i32, i32
  }
  func.func @transform_1(%arg0: i32) -> (i32, i32) {
    %c0_i32 = arith.constant 0 : i32
    %c0_i32_0 = arith.constant 0 : i32
    %c0_i32_1 = arith.constant 0 : i32
    return %c0_i32, %c0_i32_0 : i32, i32
  }
  func.func @transform_2(%arg0: i32) -> (i32, i32) {
    %c0_i32 = arith.constant 0 : i32
    %c0_i32_0 = arith.constant 0 : i32
    %c0_i32_1 = arith.constant 0 : i32
    return %c0_i32, %c0_i32_0 : i32, i32
  }
  func.func @transform_3(%arg0: i32) -> (i32, i32) {
    %c0_i32 = arith.constant 0 : i32
    %c0_i32_0 = arith.constant 0 : i32
    return %arg0, %c0_i32 : i32, i32
  }
}

module attributes {stable_mosaic.version = 11 : i64} {
  func.func @_layer_epilogue_kernel(%arg0: i32, %arg1: memref<16x32xbf16, #tpu.memory_space<vmem>>, %arg2: memref<16x32xf32, #tpu.memory_space<vmem>>, %arg3: memref<32x32xbf16, #tpu.memory_space<vmem>>, %arg4: memref<1x32xf32, #tpu.memory_space<vmem>>, %arg5: memref<1x32xf32, #tpu.memory_space<vmem>>, %arg6: memref<1x32xf32, #tpu.memory_space<vmem>>, %arg7: memref<32x128xbf16, #tpu.memory_space<vmem>>, %arg8: memref<1x128xf32, #tpu.memory_space<vmem>>, %arg9: memref<128x32xbf16, #tpu.memory_space<vmem>>, %arg10: memref<1x32xf32, #tpu.memory_space<vmem>>, %arg11: memref<1x32xf32, #tpu.memory_space<vmem>>, %arg12: memref<1x32xf32, #tpu.memory_space<vmem>>, %arg13: memref<16x32xf32, #tpu.memory_space<vmem>>) attributes {dimension_semantics = [#tpu.dimension_semantics<parallel>], iteration_bounds = array<i64: 1>, scalar_prefetch = 0 : i64, scratch_operands = 0 : i64, tpu.core_type = #tpu.core_type<tc>, window_params = [{transform_indices = @transform_0, window_bounds = array<i64: 16, 32>}, {transform_indices = @transform_1, window_bounds = array<i64: 16, 32>}, {pipeline_mode = #tpu.pipeline_mode<synchronous>, transform_indices = @transform_2, window_bounds = array<i64: 32, 32>}, {pipeline_mode = #tpu.pipeline_mode<synchronous>, transform_indices = @transform_3, window_bounds = array<i64: 1, 32>}, {pipeline_mode = #tpu.pipeline_mode<synchronous>, transform_indices = @transform_4, window_bounds = array<i64: 1, 32>}, {pipeline_mode = #tpu.pipeline_mode<synchronous>, transform_indices = @transform_5, window_bounds = array<i64: 1, 32>}, {pipeline_mode = #tpu.pipeline_mode<synchronous>, transform_indices = @transform_6, window_bounds = array<i64: 32, 128>}, {pipeline_mode = #tpu.pipeline_mode<synchronous>, transform_indices = @transform_7, window_bounds = array<i64: 1, 128>}, {pipeline_mode = #tpu.pipeline_mode<synchronous>, transform_indices = @transform_8, window_bounds = array<i64: 128, 32>}, {pipeline_mode = #tpu.pipeline_mode<synchronous>, transform_indices = @transform_9, window_bounds = array<i64: 1, 32>}, {pipeline_mode = #tpu.pipeline_mode<synchronous>, transform_indices = @transform_10, window_bounds = array<i64: 1, 32>}, {pipeline_mode = #tpu.pipeline_mode<synchronous>, transform_indices = @transform_11, window_bounds = array<i64: 1, 32>}, {transform_indices = @transform_12, window_bounds = array<i64: 16, 32>}]} {
    %c0 = arith.constant 0 : index
    %c0_0 = arith.constant 0 : index
    %0 = vector.load %arg1[%c0, %c0_0] : memref<16x32xbf16, #tpu.memory_space<vmem>>, vector<16x32xbf16>
    %c0_1 = arith.constant 0 : index
    %c0_2 = arith.constant 0 : index
    %1 = vector.load %arg3[%c0_1, %c0_2] : memref<32x32xbf16, #tpu.memory_space<vmem>>, vector<32x32xbf16>
    %cst = arith.constant dense<0.000000e+00> : vector<16x32xf32>
    %2 = tpu.matmul %0, %1, %cst {dimension_numbers = #tpu.dot_dimension_numbers<[1], [0], [0], [1], [0, 0, 1, 1], [], []>} : vector<16x32xbf16>, vector<32x32xbf16>, vector<16x32xf32> -> vector<16x32xf32>
    %c0_3 = arith.constant 0 : index
    %c0_4 = arith.constant 0 : index
    %3 = vector.load %arg4[%c0_3, %c0_4] : memref<1x32xf32, #tpu.memory_space<vmem>>, vector<1x32xf32>
    %4 = vector.broadcast %3 : vector<1x32xf32> to vector<16x32xf32>
    %5 = arith.addf %2, %4 : vector<16x32xf32>
    %c0_5 = arith.constant 0 : index
    %c0_6 = arith.constant 0 : index
    %6 = vector.load %arg2[%c0_5, %c0_6] : memref<16x32xf32, #tpu.memory_space<vmem>>, vector<16x32xf32>
    %7 = arith.addf %5, %6 : vector<16x32xf32>
    %c0_7 = arith.constant 0 : index
    %c0_8 = arith.constant 0 : index
    %8 = vector.load %arg5[%c0_7, %c0_8] : memref<1x32xf32, #tpu.memory_space<vmem>>, vector<1x32xf32>
    %c0_9 = arith.constant 0 : index
    %c0_10 = arith.constant 0 : index
    %9 = vector.load %arg6[%c0_9, %c0_10] : memref<1x32xf32, #tpu.memory_space<vmem>>, vector<1x32xf32>
    %cst_11 = arith.constant dense<0.000000e+00> : vector<16xf32>
    %10 = vector.multi_reduction <add>, %7, %cst_11 [1] : vector<16x32xf32> to vector<16xf32>
    %11 = vector.shape_cast %10 : vector<16xf32> to vector<16x1xf32>
    %cst_12 = arith.constant 3.200000e+01 : f32
    %12 = vector.broadcast %cst_12 : f32 to vector<16x1xf32>
    %13 = arith.divf %11, %12 : vector<16x1xf32>
    %14 = vector.broadcast %13 : vector<16x1xf32> to vector<16x32xf32>
    %15 = arith.subf %7, %14 : vector<16x32xf32>
    %16 = arith.mulf %15, %15 : vector<16x32xf32>
    %cst_13 = arith.constant dense<0.000000e+00> : vector<16xf32>
    %17 = vector.multi_reduction <add>, %16, %cst_13 [1] : vector<16x32xf32> to vector<16xf32>
    %18 = vector.shape_cast %17 : vector<16xf32> to vector<16x1xf32>
    %cst_14 = arith.constant 3.200000e+01 : f32
    %19 = vector.broadcast %cst_14 : f32 to vector<16x1xf32>
    %20 = arith.divf %18, %19 : vector<16x1xf32>
    %cst_15 = arith.constant 9.99999974E-6 : f32
    %21 = vector.broadcast %cst_15 : f32 to vector<16x1xf32>
    %22 = arith.addf %20, %21 : vector<16x1xf32>
    %23 = math.rsqrt %22 : vector<16x1xf32>
    %24 = vector.broadcast %23 : vector<16x1xf32> to vector<16x32xf32>
    %25 = arith.mulf %15, %24 : vector<16x32xf32>
    %26 = vector.broadcast %8 : vector<1x32xf32> to vector<16x32xf32>
    %27 = arith.mulf %25, %26 : vector<16x32xf32>
    %28 = vector.broadcast %9 : vector<1x32xf32> to vector<16x32xf32>
    %29 = arith.addf %27, %28 : vector<16x32xf32>
    %30 = arith.truncf %29 : vector<16x32xf32> to vector<16x32xbf16>
    %c0_16 = arith.constant 0 : index
    %c0_17 = arith.constant 0 : index
    %31 = vector.load %arg7[%c0_16, %c0_17] : memref<32x128xbf16, #tpu.memory_space<vmem>>, vector<32x128xbf16>
    %cst_18 = arith.constant dense<0.000000e+00> : vector<16x128xf32>
    %32 = tpu.matmul %30, %31, %cst_18 {dimension_numbers = #tpu.dot_dimension_numbers<[1], [0], [0], [1], [0, 0, 1, 1], [], []>} : vector<16x32xbf16>, vector<32x128xbf16>, vector<16x128xf32> -> vector<16x128xf32>
    %c0_19 = arith.constant 0 : index
    %c0_20 = arith.constant 0 : index
    %33 = vector.load %arg8[%c0_19, %c0_20] : memref<1x128xf32, #tpu.memory_space<vmem>>, vector<1x128xf32>
    %34 = vector.broadcast %33 : vector<1x128xf32> to vector<16x128xf32>
    %35 = arith.addf %32, %34 : vector<16x128xf32>
    %cst_21 = arith.constant 0.000000e+00 : f32
    %36 = vector.broadcast %cst_21 : f32 to vector<16x128xf32>
    %37 = arith.maximumf %35, %36 : vector<16x128xf32>
    %38 = arith.truncf %37 : vector<16x128xf32> to vector<16x128xbf16>
    %c0_22 = arith.constant 0 : index
    %c0_23 = arith.constant 0 : index
    %39 = vector.load %arg9[%c0_22, %c0_23] : memref<128x32xbf16, #tpu.memory_space<vmem>>, vector<128x32xbf16>
    %cst_24 = arith.constant dense<0.000000e+00> : vector<16x32xf32>
    %40 = tpu.matmul %38, %39, %cst_24 {dimension_numbers = #tpu.dot_dimension_numbers<[1], [0], [0], [1], [0, 0, 1, 1], [], []>} : vector<16x128xbf16>, vector<128x32xbf16>, vector<16x32xf32> -> vector<16x32xf32>
    %c0_25 = arith.constant 0 : index
    %c0_26 = arith.constant 0 : index
    %41 = vector.load %arg10[%c0_25, %c0_26] : memref<1x32xf32, #tpu.memory_space<vmem>>, vector<1x32xf32>
    %42 = vector.broadcast %41 : vector<1x32xf32> to vector<16x32xf32>
    %43 = arith.addf %40, %42 : vector<16x32xf32>
    %44 = arith.addf %43, %29 : vector<16x32xf32>
    %c0_27 = arith.constant 0 : index
    %c0_28 = arith.constant 0 : index
    %45 = vector.load %arg11[%c0_27, %c0_28] : memref<1x32xf32, #tpu.memory_space<vmem>>, vector<1x32xf32>
    %c0_29 = arith.constant 0 : index
    %c0_30 = arith.constant 0 : index
    %46 = vector.load %arg12[%c0_29, %c0_30] : memref<1x32xf32, #tpu.memory_space<vmem>>, vector<1x32xf32>
    %cst_31 = arith.constant dense<0.000000e+00> : vector<16xf32>
    %47 = vector.multi_reduction <add>, %44, %cst_31 [1] : vector<16x32xf32> to vector<16xf32>
    %48 = vector.shape_cast %47 : vector<16xf32> to vector<16x1xf32>
    %cst_32 = arith.constant 3.200000e+01 : f32
    %49 = vector.broadcast %cst_32 : f32 to vector<16x1xf32>
    %50 = arith.divf %48, %49 : vector<16x1xf32>
    %51 = vector.broadcast %50 : vector<16x1xf32> to vector<16x32xf32>
    %52 = arith.subf %44, %51 : vector<16x32xf32>
    %53 = arith.mulf %52, %52 : vector<16x32xf32>
    %cst_33 = arith.constant dense<0.000000e+00> : vector<16xf32>
    %54 = vector.multi_reduction <add>, %53, %cst_33 [1] : vector<16x32xf32> to vector<16xf32>
    %55 = vector.shape_cast %54 : vector<16xf32> to vector<16x1xf32>
    %cst_34 = arith.constant 3.200000e+01 : f32
    %56 = vector.broadcast %cst_34 : f32 to vector<16x1xf32>
    %57 = arith.divf %55, %56 : vector<16x1xf32>
    %cst_35 = arith.constant 9.99999974E-6 : f32
    %58 = vector.broadcast %cst_35 : f32 to vector<16x1xf32>
    %59 = arith.addf %57, %58 : vector<16x1xf32>
    %60 = math.rsqrt %59 : vector<16x1xf32>
    %61 = vector.broadcast %60 : vector<16x1xf32> to vector<16x32xf32>
    %62 = arith.mulf %52, %61 : vector<16x32xf32>
    %63 = vector.broadcast %45 : vector<1x32xf32> to vector<16x32xf32>
    %64 = arith.mulf %62, %63 : vector<16x32xf32>
    %65 = vector.broadcast %46 : vector<1x32xf32> to vector<16x32xf32>
    %66 = arith.addf %64, %65 : vector<16x32xf32>
    %c0_36 = arith.constant 0 : index
    %c0_37 = arith.constant 0 : index
    %67 = vector.load %arg13[%c0_36, %c0_37] : memref<16x32xf32, #tpu.memory_space<vmem>>, vector<16x32xf32>
    tpu.vector_store %arg13[%c0_36, %c0_37], %66 {strides = array<i32>} : memref<16x32xf32, #tpu.memory_space<vmem>>, vector<16x32xf32>,
    return
  }
  func.func @transform_0(%arg0: i32) -> (i32, i32) {
    %c0_i32 = arith.constant 0 : i32
    %c0_i32_0 = arith.constant 0 : i32
    return %arg0, %c0_i32 : i32, i32
  }
  func.func @transform_1(%arg0: i32) -> (i32, i32) {
    %c0_i32 = arith.constant 0 : i32
    %c0_i32_0 = arith.constant 0 : i32
    return %arg0, %c0_i32 : i32, i32
  }
  func.func @transform_2(%arg0: i32) -> (i32, i32) {
    %c0_i32 = arith.constant 0 : i32
    %c0_i32_0 = arith.constant 0 : i32
    %c0_i32_1 = arith.constant 0 : i32
    return %c0_i32, %c0_i32_0 : i32, i32
  }
  func.func @transform_3(%arg0: i32) -> (i32, i32) {
    %c0_i32 = arith.constant 0 : i32
    %c0_i32_0 = arith.constant 0 : i32
    %c0_i32_1 = arith.constant 0 : i32
    return %c0_i32, %c0_i32_0 : i32, i32
  }
  func.func @transform_4(%arg0: i32) -> (i32, i32) {
    %c0_i32 = arith.constant 0 : i32
    %c0_i32_0 = arith.constant 0 : i32
    %c0_i32_1 = arith.constant 0 : i32
    return %c0_i32, %c0_i32_0 : i32, i32
  }
  func.func @transform_5(%arg0: i32) -> (i32, i32) {
    %c0_i32 = arith.constant 0 : i32
    %c0_i32_0 = arith.constant 0 : i32
    %c0_i32_1 = arith.constant 0 : i32
    return %c0_i32, %c0_i32_0 : i32, i32
  }
  func.func @transform_6(%arg0: i32) -> (i32, i32) {
    %c0_i32 = arith.constant 0 : i32
    %c0_i32_0 = arith.constant 0 : i32
    %c0_i32_1 = arith.constant 0 : i32
    return %c0_i32, %c0_i32_0 : i32, i32
  }
  func.func @transform_7(%arg0: i32) -> (i32, i32) {
    %c0_i32 = arith.constant 0 : i32
    %c0_i32_0 = arith.constant 0 : i32
    %c0_i32_1 = arith.constant 0 : i32
    return %c0_i32, %c0_i32_0 : i32, i32
  }
  func.func @transform_8(%arg0: i32) -> (i32, i32) {
    %c0_i32 = arith.constant 0 : i32
    %c0_i32_0 = arith.constant 0 : i32
    %c0_i32_1 = arith.constant 0 : i32
    return %c0_i32, %c0_i32_0 : i32, i32
  }
  func.func @transform_9(%arg0: i32) -> (i32, i32) {
    %c0_i32 = arith.constant 0 : i32
    %c0_i32_0 = arith.constant 0 : i32
    %c0_i32_1 = arith.constant 0 : i32
    return %c0_i32, %c0_i32_0 : i32, i32
  }
  func.func @transform_10(%arg0: i32) -> (i32, i32) {
    %c0_i32 = arith.constant 0 : i32
    %c0_i32_0 = arith.constant 0 : i32
    %c0_i32_1 = arith.constant 0 : i32
    return %c0_i32, %c0_i32_0 : i32, i32
  }
  func.func @transform_11(%arg0: i32) -> (i32, i32) {
    %c0_i32 = arith.constant 0 : i32
    %c0_i32_0 = arith.constant 0 : i32
    %c0_i32_1 = arith.constant 0 : i32
    return %c0_i32, %c0_i32_0 : i32, i32
  }
  func.func @transform_12(%arg0: i32) -> (i32, i32) {
    %c0_i32 = arith.constant 0 : i32
    %c0_i32_0 = arith.constant 0 : i32
    return %arg0, %c0_i32 : i32, i32
  }
}

module attributes {stable_mosaic.version = 11 : i64} {
  func.func @_pool_head_kernel(%arg0: i32, %arg1: memref<2x8x32xf32, #tpu.memory_space<vmem>>, %arg2: memref<32x32xbf16, #tpu.memory_space<vmem>>, %arg3: memref<1x32xf32, #tpu.memory_space<vmem>>, %arg4: memref<2x32xf32, #tpu.memory_space<vmem>>, %arg5: memref<2x32xf32, #tpu.memory_space<vmem>>) attributes {dimension_semantics = [#tpu.dimension_semantics<arbitrary>], iteration_bounds = array<i64: 1>, scalar_prefetch = 0 : i64, scratch_operands = 1 : i64, tpu.core_type = #tpu.core_type<tc>, window_params = [{transform_indices = @transform_0, window_bounds = array<i64: 2, 8, 32>}, {pipeline_mode = #tpu.pipeline_mode<synchronous>, transform_indices = @transform_1, window_bounds = array<i64: 32, 32>}, {pipeline_mode = #tpu.pipeline_mode<synchronous>, transform_indices = @transform_2, window_bounds = array<i64: 1, 32>}, {pipeline_mode = #tpu.pipeline_mode<synchronous>, transform_indices = @transform_3, window_bounds = array<i64: 2, 32>}]} {
    %c0_i32 = arith.constant 0 : i32
    %0 = arith.cmpi eq, %arg0, %c0_i32 : i32
    %1 = arith.extui %0 : i1 to i32
    %c0_i32_0 = arith.constant 0 : i32
    %2 = arith.cmpi ne, %1, %c0_i32_0 : i32
    scf.if %2 {
      %cst_9 = arith.constant 0.000000e+00 : f32
      %11 = vector.broadcast %cst_9 : f32 to vector<2x32xf32>
      %c0_10 = arith.constant 0 : index
      %c0_11 = arith.constant 0 : index
      %12 = vector.load %arg5[%c0_10, %c0_11] : memref<2x32xf32, #tpu.memory_space<vmem>>, vector<2x32xf32>
      tpu.vector_store %arg5[%c0_10, %c0_11], %11 {strides = array<i32>} : memref<2x32xf32, #tpu.memory_space<vmem>>, vector<2x32xf32>,
    } else {
    }
    %c0 = arith.constant 0 : index
    %c0_1 = arith.constant 0 : index
    %c0_2 = arith.constant 0 : index
    %3 = vector.load %arg1[%c0, %c0_1, %c0_2] : memref<2x8x32xf32, #tpu.memory_space<vmem>>, vector<2x8x32xf32>
    %c0_3 = arith.constant 0 : index
    %c0_4 = arith.constant 0 : index
    %4 = vector.load %arg5[%c0_3, %c0_4] : memref<2x32xf32, #tpu.memory_space<vmem>>, vector<2x32xf32>
    %cst = arith.constant dense<0.000000e+00> : vector<2x32xf32>
    %5 = vector.multi_reduction <add>, %3, %cst [1] : vector<2x8x32xf32> to vector<2x32xf32>
    %6 = arith.addf %4, %5 : vector<2x32xf32>
    %c0_5 = arith.constant 0 : index
    %c0_6 = arith.constant 0 : index
    %7 = vector.load %arg5[%c0_5, %c0_6] : memref<2x32xf32, #tpu.memory_space<vmem>>, vector<2x32xf32>
    tpu.vector_store %arg5[%c0_5, %c0_6], %6 {strides = array<i32>} : memref<2x32xf32, #tpu.memory_space<vmem>>, vector<2x32xf32>,
    %c0_i32_7 = arith.constant 0 : i32
    %8 = arith.cmpi eq, %arg0, %c0_i32_7 : i32
    %9 = arith.extui %8 : i1 to i32
    %c0_i32_8 = arith.constant 0 : i32
    %10 = arith.cmpi ne, %9, %c0_i32_8 : i32
    scf.if %10 {
      %c0_9 = arith.constant 0 : index
      %c0_10 = arith.constant 0 : index
      %11 = vector.load %arg5[%c0_9, %c0_10] : memref<2x32xf32, #tpu.memory_space<vmem>>, vector<2x32xf32>
      %cst_11 = arith.constant 1.250000e-01 : f32
      %12 = vector.broadcast %cst_11 : f32 to vector<2x32xf32>
      %13 = arith.mulf %11, %12 : vector<2x32xf32>
      %14 = arith.truncf %13 : vector<2x32xf32> to vector<2x32xbf16>
      %c0_12 = arith.constant 0 : index
      %c0_13 = arith.constant 0 : index
      %15 = vector.load %arg2[%c0_12, %c0_13] : memref<32x32xbf16, #tpu.memory_space<vmem>>, vector<32x32xbf16>
      %cst_14 = arith.constant dense<0.000000e+00> : vector<2x32xf32>
      %16 = tpu.matmul %14, %15, %cst_14 {dimension_numbers = #tpu.dot_dimension_numbers<[1], [0], [0], [1], [0, 0, 1, 1], [], []>} : vector<2x32xbf16>, vector<32x32xbf16>, vector<2x32xf32> -> vector<2x32xf32>
      %c0_15 = arith.constant 0 : index
      %c0_16 = arith.constant 0 : index
      %17 = vector.load %arg3[%c0_15, %c0_16] : memref<1x32xf32, #tpu.memory_space<vmem>>, vector<1x32xf32>
      %18 = vector.broadcast %17 : vector<1x32xf32> to vector<2x32xf32>
      %19 = arith.addf %16, %18 : vector<2x32xf32>
      %c0_17 = arith.constant 0 : index
      %c0_18 = arith.constant 0 : index
      %20 = vector.load %arg4[%c0_17, %c0_18] : memref<2x32xf32, #tpu.memory_space<vmem>>, vector<2x32xf32>
      tpu.vector_store %arg4[%c0_17, %c0_18], %19 {strides = array<i32>} : memref<2x32xf32, #tpu.memory_space<vmem>>, vector<2x32xf32>,
    } else {
    }
    return
  }
  func.func @transform_0(%arg0: i32) -> (i32, i32, i32) {
    %c0_i32 = arith.constant 0 : i32
    %c0_i32_0 = arith.constant 0 : i32
    %c0_i32_1 = arith.constant 0 : i32
    return %c0_i32, %arg0, %c0_i32_0 : i32, i32, i32
  }
  func.func @transform_1(%arg0: i32) -> (i32, i32) {
    %c0_i32 = arith.constant 0 : i32
    %c0_i32_0 = arith.constant 0 : i32
    %c0_i32_1 = arith.constant 0 : i32
    return %c0_i32, %c0_i32_0 : i32, i32
  }
  func.func @transform_2(%arg0: i32) -> (i32, i32) {
    %c0_i32 = arith.constant 0 : i32
    %c0_i32_0 = arith.constant 0 : i32
    %c0_i32_1 = arith.constant 0 : i32
    return %c0_i32, %c0_i32_0 : i32, i32
  }
  func.func @transform_3(%arg0: i32) -> (i32, i32) {
    %c0_i32 = arith.constant 0 : i32
    %c0_i32_0 = arith.constant 0 : i32
    %c0_i32_1 = arith.constant 0 : i32
    return %c0_i32, %c0_i32_0 : i32, i32
  }
}

</mosaic_0001>

<bundles_post_ra>
// kernel: encoder_forward.13
= control target key start
LH: loop header
LB: loop body
LE: loop exit
PB: predicated region body
PF: predicated region fallthrough
CT: control target
= control target key end

     0   :  { %v112_v0 = vmov 0.0   ;;  %vm41_vm0 = vcmask 1042432   ;;  %vm113_vm1 = vmmov 0   ;;  %vm37_vm2 = vcmask 179200   ;;  %s155_s1 = inlined_call_operand.vmem [shape: bf16[22,32], index: 1, kind: input, shape index: {}]   ;;  %s156_s0 = inlined_call_operand.vmem [shape: f32[16,22], index: 0, kind: input, shape index: {}]   ;;  %s157_s2 = inlined_call_operand.vmem [shape: f32[1,32], index: 2, kind: input, shape index: {}]   ;;  %s158_s3 = inlined_call_operand.vmem [shape: f32[16,32], index: 3, kind: output, shape index: {}]  }
   0x1   :  { %100 = vmatprep.subr.bf16.mxu0 %v112_v0  ;;  %v110_v1 = vld [vmem:[%s155_s1] sm:$0xff]   ;;  %104 = vmatprep.mubr.msk.bf16.mxu0 %vm113_vm1, %v112_v0  ;;  %v111_v2 = vld [vmem:[%s155_s1 + $0x8] ss:$0 sps:$4 sm:$0x77]   ;;  %vm86_vm3 = vcmask 261120  }
   0x2   :  { %101 = vmatpush3.bf16.msra.mxu0 %v110_v1  ;;  %v15_v3 = vld [vmem:[%s156_s0] sm:$0xff]  ;;  %v16_v4 = vld [vmem:[%s156_s0 + $0x8] sm:$0xff]  ;;  %v43_v5 = vsel %vm41_vm0, %v111_v2, 0 }
   0x3   :  { %102 = vmatprep.subr.bf16.mxu0 %v112_v0  ;;  %v17_v6 = vpack.c.bf16 %v16_v4, %v15_v3  ;;  %v93_v7 = vld [vmem:[%s157_s2] ss:$0 sm:$0xff] }
   0x6   :  { %103 = vmatpush3.bf16.msra.mxu0 %v43_v5 }
   0x9   :  { %105 = vmatmul.mubr.msk.bf16.vlgmr.msra.gmra.mrb[0].mxu0 %vm37_vm2, %v17_v6 }
  0xdc   :  { %v79_v8 = vpop.f32.mrb[0].mxu0 }
  0xdd   :  { %v80_v9 = vadd.f32 %v93_v7, %v79_v8  ;;  %v106_v10 = vpop.f32.mrb[1].mxu0 }
  0xde   :  { %v82_v11 = vpop.f32.mrb[2].mxu0 }
  0xdf   :  { %87 = vst.msk [vmem:[%s158_s3] sm:$0xff] %vm86_vm3, %v80_v9  ;;  %v83_v12 = vadd.f32 %v93_v7, %v82_v11  ;;  %v107_v13 = vpop.f32.mrb[3].mxu0 }
  0xe1   :  { %88 = vst.msk [vmem:[%s158_s3 + $0x8] sm:$0xff] %vm86_vm3, %v83_v12 }

// kernel: encoder_forward.15
= control target key start
LH: loop header
LB: loop body
LE: loop exit
PB: predicated region body
PF: predicated region fallthrough
CT: control target
= control target key end

     0   :  { %v124_v0 = vmov 0.0   ;;  %vm125_vm0 = vmmov 0   ;;  %vm41_vm1 = vcmask 261120   ;;  %vm94_vm2 = vcmask 257024   ;;  %s167_s1 = inlined_call_operand.vmem [shape: bf16[32,32], index: 1, kind: input, shape index: {}]   ;;  %s168_s0 = inlined_call_operand.vmem [shape: f32[16,32], index: 0, kind: input, shape index: {}]   ;;  %s169_s2 = inlined_call_operand.vmem [shape: f32[1,32], index: 2, kind: input, shape index: {}]   ;;  %s170_s3 = inlined_call_operand.vmem [shape: bf16[16,32], index: 3, kind: output, shape index: {}]  }
   0x1   :  { %112 = vmatprep.subr.bf16.mxu0 %v124_v0  ;;  %v122_v1 = vld [vmem:[%s167_s1] sm:$0xff]   ;;  %116 = vmatprep.mubr.msk.bf16.mxu0 %vm125_vm0, %v124_v0  ;;  %v123_v2 = vld [vmem:[%s167_s1 + $0x8] sm:$0xff]  }
   0x2   :  { %113 = vmatpush3.bf16.msra.mxu0 %v122_v1  ;;  %v15_v3 = vld [vmem:[%s168_s0] sm:$0xff]  ;;  %v16_v4 = vld [vmem:[%s168_s0 + $0x8] sm:$0xff] }
   0x3   :  { %114 = vmatprep.subr.bf16.mxu0 %v124_v0  ;;  %v17_v5 = vpack.c.bf16 %v16_v4, %v15_v3  ;;  %v101_v6 = vld [vmem:[%s169_s2] ss:$0 sm:$0xff] }
   0x6   :  { %115 = vmatpush3.bf16.msra.mxu0 %v123_v2 }
   0x9   :  { %117 = vmatmul.mubr.msk.bf16.vlgmr.msra.gmra.mrb[0].mxu0 %vm41_vm1, %v17_v5 }
  0xdc   :  { %v79_v7 = vpop.f32.mrb[0].mxu0 }
  0xdd   :  { %v80_v8 = vadd.f32 %v101_v6, %v79_v7  ;;  %v118_v9 = vpop.f32.mrb[1].mxu0 }
  0xde   :  { %v82_v10 = vpop.f32.mrb[2].mxu0 }
  0xdf   :  { %v107_v11 = vpack.c.bf16 %v80_v8, %v80_v8  ;;  %v83_v12 = vadd.f32 %v101_v6, %v82_v10  ;;  %v119_v13 = vpop.f32.mrb[3].mxu0 }
  0xe1   :  { %95 = vst.msk [vmem:[%s170_s3] sm:$0xf] %vm94_vm2, %v107_v11  ;;  %v108_v14 = vpack.c.bf16 %v83_v12, %v83_v12 }
  0xe3   :  { %96 = vst.msk [vmem:[%s170_s3 + $0x4] sm:$0xf] %vm94_vm2, %v108_v14 }

// kernel: encoder_forward.14
= control target key start
LH: loop header
LB: loop body
LE: loop exit
PB: predicated region body
PF: predicated region fallthrough
CT: control target
= control target key end

     0   :  { %v112_v0 = vmov 0.0   ;;  %vm41_vm0 = vcmask 1043456   ;;  %vm113_vm1 = vmmov 0   ;;  %vm37_vm2 = vcmask 195584   ;;  %s155_s1 = inlined_call_operand.vmem [shape: bf16[24,32], index: 1, kind: input, shape index: {}]   ;;  %s156_s0 = inlined_call_operand.vmem [shape: f32[16,24], index: 0, kind: input, shape index: {}]   ;;  %s157_s2 = inlined_call_operand.vmem [shape: f32[1,32], index: 2, kind: input, shape index: {}]   ;;  %s158_s3 = inlined_call_operand.vmem [shape: f32[16,32], index: 3, kind: output, shape index: {}]  }
   0x1   :  { %100 = vmatprep.subr.bf16.mxu0 %v112_v0  ;;  %v110_v1 = vld [vmem:[%s155_s1] sm:$0xff]   ;;  %104 = vmatprep.mubr.msk.bf16.mxu0 %vm113_vm1, %v112_v0  ;;  %v111_v2 = vld [vmem:[%s155_s1 + $0x8] ss:$0 sps:$4 sm:$0xff]   ;;  %vm86_vm3 = vcmask 261120  }
   0x2   :  { %101 = vmatpush3.bf16.msra.mxu0 %v110_v1  ;;  %v15_v3 = vld [vmem:[%s156_s0] sm:$0xff]  ;;  %v16_v4 = vld [vmem:[%s156_s0 + $0x8] sm:$0xff]  ;;  %v43_v5 = vsel %vm41_vm0, %v111_v2, 0 }
   0x3   :  { %102 = vmatprep.subr.bf16.mxu0 %v112_v0  ;;  %v17_v6 = vpack.c.bf16 %v16_v4, %v15_v3  ;;  %v93_v7 = vld [vmem:[%s157_s2] ss:$0 sm:$0xff] }
   0x6   :  { %103 = vmatpush3.bf16.msra.mxu0 %v43_v5 }
   0x9   :  { %105 = vmatmul.mubr.msk.bf16.vlgmr.msra.gmra.mrb[0].mxu0 %vm37_vm2, %v17_v6 }
  0xdc   :  { %v79_v8 = vpop.f32.mrb[0].mxu0 }
  0xdd   :  { %v80_v9 = vadd.f32 %v93_v7, %v79_v8  ;;  %v106_v10 = vpop.f32.mrb[1].mxu0 }
  0xde   :  { %v82_v11 = vpop.f32.mrb[2].mxu0 }
  0xdf   :  { %87 = vst.msk [vmem:[%s158_s3] sm:$0xff] %vm86_vm3, %v80_v9  ;;  %v83_v12 = vadd.f32 %v93_v7, %v82_v11  ;;  %v107_v13 = vpop.f32.mrb[3].mxu0 }
  0xe1   :  { %88 = vst.msk [vmem:[%s158_s3 + $0x8] sm:$0xff] %vm86_vm3, %v83_v12 }

// kernel: encoder_forward.16
= control target key start
LH: loop header
LB: loop body
LE: loop exit
PB: predicated region body
PF: predicated region fallthrough
CT: control target
= control target key end

     0   :  { %v124_v0 = vmov 0.0   ;;  %vm125_vm0 = vmmov 0   ;;  %vm41_vm1 = vcmask 261120   ;;  %vm94_vm2 = vcmask 519168   ;;  %s167_s1 = inlined_call_operand.vmem [shape: bf16[32,64], index: 1, kind: input, shape index: {}]   ;;  %s168_s0 = inlined_call_operand.vmem [shape: f32[16,32], index: 0, kind: input, shape index: {}]   ;;  %s169_s2 = inlined_call_operand.vmem [shape: f32[1,64], index: 2, kind: input, shape index: {}]   ;;  %s170_s3 = inlined_call_operand.vmem [shape: bf16[16,64], index: 3, kind: output, shape index: {}]  }
   0x1   :  { %112 = vmatprep.subr.bf16.mxu0 %v124_v0  ;;  %v122_v1 = vld [vmem:[%s167_s1] sm:$0xff]   ;;  %116 = vmatprep.mubr.msk.bf16.mxu0 %vm125_vm0, %v124_v0  ;;  %v123_v2 = vld [vmem:[%s167_s1 + $0x8] sm:$0xff]  }
   0x2   :  { %113 = vmatpush3.bf16.msra.mxu0 %v122_v1  ;;  %v15_v3 = vld [vmem:[%s168_s0] sm:$0xff]  ;;  %v16_v4 = vld [vmem:[%s168_s0 + $0x8] sm:$0xff] }
   0x3   :  { %114 = vmatprep.subr.bf16.mxu0 %v124_v0  ;;  %v17_v5 = vpack.c.bf16 %v16_v4, %v15_v3  ;;  %v101_v6 = vld [vmem:[%s169_s2] ss:$0 sm:$0xff] }
   0x6   :  { %115 = vmatpush3.bf16.msra.mxu0 %v123_v2 }
   0x9   :  { %117 = vmatmul.mubr.msk.bf16.vlgmr.msra.gmra.mrb[0].mxu0 %vm41_vm1, %v17_v5 }
  0xdc   :  { %v79_v7 = vpop.f32.mrb[0].mxu0 }
  0xdd   :  { %v80_v8 = vadd.f32 %v101_v6, %v79_v7  ;;  %v118_v9 = vpop.f32.mrb[1].mxu0 }
  0xde   :  { %v82_v10 = vpop.f32.mrb[2].mxu0 }
  0xdf   :  { %v107_v11 = vpack.c.bf16 %v80_v8, %v80_v8  ;;  %v83_v12 = vadd.f32 %v101_v6, %v82_v10  ;;  %v119_v13 = vpop.f32.mrb[3].mxu0 }
  0xe1   :  { %95 = vst.msk [vmem:[%s170_s3] sm:$0xf] %vm94_vm2, %v107_v11  ;;  %v108_v14 = vpack.c.bf16 %v83_v12, %v83_v12 }
  0xe3   :  { %96 = vst.msk [vmem:[%s170_s3 + $0x4] sm:$0xf] %vm94_vm2, %v108_v14 }

// kernel: encoder_forward.18
= control target key start
LH: loop header
LB: loop body
LE: loop exit
PB: predicated region body
PF: predicated region fallthrough
CT: control target
= control target key end

     0   :  { %v181_v0 = vmov 0.0   ;;  %vm182_vm0 = vmmov 0   ;;  %vm54_vm1 = vcmask 261120   ;;  %s255_s2 = inlined_call_operand.vmem [shape: bf16[32,32], index: 2, kind: input, shape index: {}]   ;;  %s256_s0 = inlined_call_operand.vmem [shape: bf16[16,32], index: 0, kind: input, shape index: {}]   ;;  %s257_s3 = inlined_call_operand.vmem [shape: f32[1,32], index: 3, kind: input, shape index: {}]   ;;  %s258_s1 = inlined_call_operand.vmem [shape: f32[16,32], index: 1, kind: input, shape index: {}]   ;;  %s259_s4 = inlined_call_operand.vmem [shape: f32[1,32], index: 4, kind: input, shape index: {}]   ;;  %s260_s5 = inlined_call_operand.vmem [shape: f32[1,32], index: 5, kind: input, shape index: {}]   ;;  %s261_s6 = inlined_call_operand.vmem [shape: f32[16,32], index: 6, kind: output, shape index: {}]  }
   0x1   :  { %164 = vmatprep.subr.bf16.mxu0 %v181_v0  ;;  %v174_v1 = vld [vmem:[%s255_s2] sm:$0xff]   ;;  %168 = vmatprep.mubr.msk.bf16.mxu0 %vm182_vm0, %v181_v0  ;;  %v175_v2 = vld [vmem:[%s255_s2 + $0x8] sm:$0xff]  }
   0x2   :  { %165 = vmatpush3.bf16.msra.mxu0 %v174_v1  ;;  %v176_v3 = vld [vmem:[%s256_s0] sm:$0xff]   ;;  %v100_v10 = vld [vmem:[%s258_s1 + $0x8] sm:$0xff] }
   0x3   :  { %166 = vmatprep.subr.bf16.mxu0 %v181_v0  ;;  %v154_v4 = vld [vmem:[%s257_s3] ss:$0 sm:$0xff] }
   0x4   :  { %v99_v6 = vld [vmem:[%s258_s1] sm:$0xff] }
   0x5   :  { %v159_v34 = vld [vmem:[%s259_s4] ss:$0 sm:$0xff] }
   0x6   :  { %167 = vmatpush3.bf16.msra.mxu0 %v175_v2  ;;  %v160_v36 = vld [vmem:[%s260_s5] ss:$0 sm:$0xff] }
   0x9   :  { %169 = vmatmul.mubr.msk.bf16.vlgmr.msra.gmra.mrb[0].mxu0 %vm54_vm1, %v176_v3 }
  0xdc   :  { %v92_v5 = vpop.f32.mrb[0].mxu0 }
  0xdd   :  { %v93_v7 = vadd.f32 %v154_v4, %v92_v5  ;;  %v170_v8 = vpop.f32.mrb[1].mxu0 }
  0xde   :  { %v95_v9 = vpop.f32.mrb[2].mxu0 }
  0xdf   :  { %v96_v11 = vadd.f32 %v154_v4, %v95_v9  ;;  %v171_v12 = vpop.f32.mrb[3].mxu0  ;;  %v101_v13 = vadd.f32 %v99_v6, %v93_v7 }
  0xe1   :  { %v105_v14 = vsel %vm54_vm1, %v101_v13, 0.0  ;;  %v102_v15 = vadd.f32 %v100_v10, %v96_v11 }
  0xe2   :  { %106 = vadd.xlane.f32.xlu0 %v105_v14 }
  0xe3   :  { %v108_v16 = vsel %vm54_vm1, %v102_v15, 0.0 }
  0xe6   :  { %109 = vadd.xlane.f32.xlu0 %v108_v16 }
 0x16f   :  { %v107_v17 = vpop.xlane.xlu0 %106 }
 0x170   :  { %v112_v18 = vmul.f32 0.03125, %v107_v17 }
 0x172   :  { %v114_v19 = vsub.f32 %v101_v13, %v112_v18 }
 0x173   :  { %v110_v20 = vpop.xlane.xlu0 %109 }
 0x174   :  { %v113_v21 = vmul.f32 0.03125, %v110_v20  ;;  %v116_v22 = vmul.f32 %v114_v19, %v114_v19 }
 0x176   :  { %v115_v23 = vsub.f32 %v102_v15, %v113_v21  ;;  %v118_v24 = vsel %vm54_vm1, %v116_v22, 0.0 }
 0x177   :  { %119 = vadd.xlane.f32.xlu1 %v118_v24 }
 0x178   :  { %v117_v25 = vmul.f32 %v115_v23, %v115_v23 }
 0x17a   :  { %v121_v26 = vsel %vm54_vm1, %v117_v25, 0.0 }
 0x17b   :  { %122 = vadd.xlane.f32.xlu1 %v121_v26 }
 0x204   :  { %v120_v27 = vpop.xlane.xlu1 %119 }
 0x205   :  { %v124_v28 = vmul.f32 0.03125, %v120_v27 }
 0x207   :  { %v126_v29 = vadd.f32 1e-05, %v124_v28 }
 0x208   :  { %v123_v30 = vpop.xlane.xlu1 %122 }
 0x209   :  { %177 = vrsqrt.f32 %v126_v29  ;;  %v125_v31 = vmul.f32 0.03125, %v123_v30 }
 0x20b   :  { %v127_v32 = vadd.f32 1e-05, %v125_v31 }
 0x20d   :  { %179 = vrsqrt.f32 %v127_v32 }
 0x213   :  { %v178_v33 = vpop.eup %177 }
 0x214   :  { %v130_v35 = vmul.f32 %v178_v33, %v114_v19 }
 0x216   :  { %v138_v37 = vmul.f32 %v159_v34, %v130_v35 }
 0x217   :  { %v180_v38 = vpop.eup %179 }
 0x218   :  { %v146_v39 = vadd.f32 %v160_v36, %v138_v37  ;;  %v131_v40 = vmul.f32 %v180_v38, %v115_v23 }
 0x21a   :  { %148 = vst.msk [vmem:[%s261_s6] sm:$0xff] %vm54_vm1, %v146_v39  ;;  %v139_v41 = vmul.f32 %v159_v34, %v131_v40 }
 0x21c   :  { %v147_v42 = vadd.f32 %v160_v36, %v139_v41 }
 0x21e   :  { %149 = vst.msk [vmem:[%s261_s6 + $0x8] sm:$0xff] %vm54_vm1, %v147_v42 }

// kernel: encoder_forward.19
= control target key start
LH: loop header
LB: loop body
LE: loop exit
PB: predicated region body
PF: predicated region fallthrough
CT: control target
= control target key end

     0   :  { %v124_v0 = vmov 0.0   ;;  %vm125_vm0 = vmmov 0   ;;  %vm41_vm1 = vcmask 261120   ;;  %vm94_vm2 = vcmask 781312   ;;  %s167_s1 = inlined_call_operand.vmem [shape: bf16[32,96], index: 1, kind: input, shape index: {}]   ;;  %s168_s0 = inlined_call_operand.vmem [shape: f32[16,32], index: 0, kind: input, shape index: {}]   ;;  %s169_s2 = inlined_call_operand.vmem [shape: f32[1,96], index: 2, kind: input, shape index: {}]   ;;  %s170_s3 = inlined_call_operand.vmem [shape: bf16[16,96], index: 3, kind: output, shape index: {}]  }
   0x1   :  { %112 = vmatprep.subr.bf16.mxu0 %v124_v0  ;;  %v122_v1 = vld [vmem:[%s167_s1] sm:$0xff]   ;;  %116 = vmatprep.mubr.msk.bf16.mxu0 %vm125_vm0, %v124_v0  ;;  %v123_v2 = vld [vmem:[%s167_s1 + $0x8] sm:$0xff]  }
   0x2   :  { %113 = vmatpush3.bf16.msra.mxu0 %v122_v1  ;;  %v15_v3 = vld [vmem:[%s168_s0] sm:$0xff]  ;;  %v16_v4 = vld [vmem:[%s168_s0 + $0x8] sm:$0xff] }
   0x3   :  { %114 = vmatprep.subr.bf16.mxu0 %v124_v0  ;;  %v17_v5 = vpack.c.bf16 %v16_v4, %v15_v3  ;;  %v101_v6 = vld [vmem:[%s169_s2] ss:$0 sm:$0xff] }
   0x6   :  { %115 = vmatpush3.bf16.msra.mxu0 %v123_v2 }
   0x9   :  { %117 = vmatmul.mubr.msk.bf16.vlgmr.msra.gmra.mrb[0].mxu0 %vm41_vm1, %v17_v5 }
  0xdc   :  { %v79_v7 = vpop.f32.mrb[0].mxu0 }
  0xdd   :  { %v80_v8 = vadd.f32 %v101_v6, %v79_v7  ;;  %v118_v9 = vpop.f32.mrb[1].mxu0 }
  0xde   :  { %v82_v10 = vpop.f32.mrb[2].mxu0 }
  0xdf   :  { %v107_v11 = vpack.c.bf16 %v80_v8, %v80_v8  ;;  %v83_v12 = vadd.f32 %v101_v6, %v82_v10  ;;  %v119_v13 = vpop.f32.mrb[3].mxu0 }
  0xe1   :  { %95 = vst.msk [vmem:[%s170_s3] sm:$0xf] %vm94_vm2, %v107_v11  ;;  %v108_v14 = vpack.c.bf16 %v83_v12, %v83_v12 }
  0xe3   :  { %96 = vst.msk [vmem:[%s170_s3 + $0x4] sm:$0xf] %vm94_vm2, %v108_v14 }

// kernel: encoder_forward.25
= control target key start
LH: loop header
LB: loop body
LE: loop exit
PB: predicated region body
PF: predicated region fallthrough
CT: control target
= control target key end

     0   :  { %vm19_vm0 = vcmask 254976   ;;  %v143_v0 = vmov 0.0   ;;  %vm144_vm1 = vmmov 0   ;;  %vm24_vm2 = vcmask 261120   ;;  %s189_s1 = inlined_call_operand.vmem [shape: bf16[32,32], index: 1, kind: input, shape index: {}]   ;;  %s190_s0 = inlined_call_operand.vmem [shape: f32[2,8,32], index: 0, kind: input, shape index: {}]   ;;  %s191_s2 = inlined_call_operand.vmem [shape: f32[1,32], index: 2, kind: input, shape index: {}]   ;;  %s192_s3 = inlined_call_operand.vmem [shape: f32[2,32], index: 3, kind: output, shape index: {}]  }
   0x1   :  { %20 = vst.msk [vmem:[#allocation2] sm:$0x3] %vm19_vm0, %v143_v0  ;;  %131 = vmatprep.subr.bf16.mxu0 %v143_v0  ;;  %v141_v1 = vld [vmem:[%s189_s1] sm:$0xff]   ;;  %135 = vmatprep.mubr.msk.bf16.mxu0 %vm144_vm1, %v143_v0  ;;  %v142_v2 = vld [vmem:[%s189_s1 + $0x8] sm:$0xff]   ;;  %vm41_vm3 = vcmask 1041409  }
   0x2   :  { %132 = vmatpush3.bf16.msra.mxu0 %v141_v1  ;;  %v21_v3 = vld [vmem:[%s190_s0] sm:$0xff]  ;;  %v22_v4 = vld [vmem:[%s190_s0 + $0x8] sm:$0xff] }
   0x3   :  { %133 = vmatprep.subr.bf16.mxu0 %v143_v0  ;;  %v25_v5 = vsel %vm24_vm2, %v21_v3, 0.0  ;;  %v32_v6 = vsel %vm24_vm2, %v22_v4, 0.0  ;;  %v124_v25 = vld [vmem:[%s191_s2] ss:$0 sm:$0xff] }
   0x4   :  { %v26_v7 = vrot.slane %v25_v5, 4  ;;  %v33_v8 = vrot.slane %v32_v6, 4 }
   0x6   :  { %134 = vmatpush3.bf16.msra.mxu0 %v142_v2  ;;  %v27_v9 = vadd.f32 %v26_v7, %v25_v5  ;;  %v34_v10 = vadd.f32 %v33_v8, %v32_v6 }
   0x8   :  { %v28_v11 = vrot.slane %v27_v9, 2  ;;  %v35_v12 = vrot.slane %v34_v10, 2  ;;  %v23_v17 = vld [vmem:[#allocation2] sm:$0x3] }
   0xa   :  { %v29_v13 = vadd.f32 %v28_v11, %v27_v9  ;;  %v36_v14 = vadd.f32 %v35_v12, %v34_v10 }
   0xc   :  { %v30_v15 = vrot.slane %v29_v13, 1  ;;  %v37_v16 = vrot.slane %v36_v14, 1 }
   0xe   :  { %v31_v18 = vadd.f32 %v30_v15, %v29_v13  ;;  %v38_v19 = vadd.f32 %v37_v16, %v36_v14 }
  0x10   :  { %v42_v20 = vsel %vm41_vm3, %v38_v19, %v31_v18 }
  0x11   :  { %v44_v21 = vadd.f32 %v42_v20, %v23_v17 }
  0x13   :  { %46 = vst.msk [vmem:[#allocation2] sm:$0x3] %vm19_vm0, %v44_v21 }
  0x1a   :  { %v50_v22 = vld [vmem:[#allocation2] sm:$0x3] }
  0x1b   :  { %v51_v23 = vmul.f32 0.125, %v50_v22 }
  0x1d   :  { %v52_v24 = vpack.c.bf16 %v51_v23, %v51_v23 }
  0x1f   :  { %136 = vmatmul.mubr.msk.bf16.vlgmr.msra.gmra.mrb[0].mxu0 %vm24_vm2, %v52_v24 }
  0xf2   :  { %v113_v26 = vpop.f32.mrb[0].mxu0 }
  0xf3   :  { %v114_v27 = vadd.f32 %v124_v25, %v113_v26  ;;  %v137_v28 = vpop.f32.mrb[1].mxu0 }
  0xf4   :  { %v116_v29 = vpop.f32.mrb[2].mxu0 }
  0xf5   :  { %119 = vst.msk [vmem:[%s192_s3] sm:$0x3] %vm19_vm0, %v114_v27  ;;  %v138_v30 = vpop.f32.mrb[3].mxu0 }

// kernel: encoder_forward.21
= control target key start
LH: loop header
LB: loop body
LE: loop exit
PB: predicated region body
PF: predicated region fallthrough
CT: control target
= control target key end

     0   :  { %v497_v0 = vmov 0.0   ;;  %vm498_vm0 = vmmov 0   ;;  %vm72_vm1 = vcmask 261120   ;;  %s663_s2 = inlined_call_operand.vmem [shape: bf16[32,32], index: 2, kind: input, shape index: {}]   ;;  %s664_s0 = inlined_call_operand.vmem [shape: bf16[16,32], index: 0, kind: input, shape index: {}]   ;;  %s665_s3 = inlined_call_operand.vmem [shape: f32[1,32], index: 3, kind: input, shape index: {}]   ;;  %s666_s1 = inlined_call_operand.vmem [shape: f32[16,32], index: 1, kind: input, shape index: {}]   ;;  %s667_s6 = inlined_call_operand.vmem [shape: bf16[32,128], index: 6, kind: input, shape index: {}]   ;;  %s668_s8 = inlined_call_operand.vmem [shape: bf16[128,32], index: 8, kind: input, shape index: {}]   ;;  %s669_s4 = inlined_call_operand.vmem [shape: f32[1,32], index: 4, kind: input, shape index: {}]   ;;  %s670_s5 = inlined_call_operand.vmem [shape: f32[1,32], index: 5, kind: input, shape index: {}]   ;;  %s671_s7 = inlined_call_operand.vmem [shape: f32[1,128], index: 7, kind: input, shape index: {}]   ;;  %s672_s9 = inlined_call_operand.vmem [shape: f32[1,32], index: 9, kind: input, shape index: {}]   ;;  %s673_s10 = inlined_call_operand.vmem [shape: f32[1,32], index: 10, kind: input, shape index: {}]   ;;  %s674_s11 = inlined_call_operand.vmem [shape: f32[1,32], index: 11, kind: input, shape index: {}]   ;;  %s675_s12 = inlined_call_operand.vmem [shape: f32[16,32], index: 12, kind: output, shape index: {}]  }
   0x1   :  { %438 = vmatprep.subr.bf16.mxu1 %v497_v0  ;;  %v476_v1 = vld [vmem:[%s663_s2] sm:$0xff]   ;;  %442 = vmatprep.mubr.msk.bf16.mxu1 %vm498_vm0, %v497_v0  ;;  %v477_v2 = vld [vmem:[%s663_s2 + $0x8] sm:$0xff]   ;;  %v483_v31 = vld [vmem:[%s668_s8 + $0x10] sm:$0xff]  }
   0x2   :  { %454 = vmatprep.subr.bf16.mxu0 %v497_v0  ;;  %470 = vmatprep.mubr.msk.bf16.mxu0 %vm498_vm0, %v497_v0  ;;  %v478_v3 = vld [vmem:[%s664_s0] sm:$0xff]   ;;  %v118_v10 = vld [vmem:[%s666_s1 + $0x8] sm:$0xff]  ;;  %v484_v32 = vld [vmem:[%s668_s8 + $0x18] sm:$0xff]  }
   0x3   :  { %439 = vmatpush3.bf16.msra.mxu1 %v476_v1  ;;  %v401_v4 = vld [vmem:[%s665_s3] ss:$0 sm:$0xff]  ;;  %v480_v28 = vld [vmem:[%s667_s6 + $0x8] sm:$0xff]   ;;  %v487_v52 = vld [vmem:[%s668_s8 + $0x30] sm:$0xff]  }
   0x4   :  { %440 = vmatprep.subr.bf16.mxu1 %v497_v0  ;;  %v117_v6 = vld [vmem:[%s666_s1] sm:$0xff]  ;;  %v482_v30 = vld [vmem:[%s668_s8 + $0x8] sm:$0xff]   ;;  %v488_v53 = vld [vmem:[%s668_s8 + $0x38] sm:$0xff]  }
   0x5   :  { %v479_v27 = vld [vmem:[%s667_s6] sm:$0xff]   ;;  %v486_v34 = vld [vmem:[%s668_s8 + $0x28] sm:$0xff]  }
   0x6   :  { %v481_v29 = vld [vmem:[%s668_s8] sm:$0xff]  }
   0x7   :  { %441 = vmatpush3.bf16.msra.mxu1 %v477_v2  ;;  %455 = vmatpush3.bf16.msra.mxu0 %v481_v29  ;;  %v485_v33 = vld [vmem:[%s668_s8 + $0x20] sm:$0xff]  }
   0x8   :  { %446 = vmatprep.subr.bf16.mxu1 %v497_v0  ;;  %456 = vmatprep.subr.bf16.mxu0 %v497_v0  ;;  %v406_v43 = vld [vmem:[%s669_s4] ss:$0 sm:$0xff] }
   0x9   :  { %v407_v47 = vld [vmem:[%s670_s5] ss:$0 sm:$0xff] }
   0xa   :  { %443 = vmatmul.mubr.msk.bf16.vlgmr.msra.gmra.mrb[0].mxu1 %vm72_vm1, %v478_v3  ;;  %v408_v54 = vld [vmem:[%s671_s7] ss:$0 sm:$0xff] }
   0xb   :  { %450 = vmatprep.mubr.msk.bf16.mxu1 %vm498_vm0, %v497_v0  ;;  %447 = vmatpush3.bf16.msra.mxu1 %v479_v27 }
   0xc   :  { %448 = vmatprep.subr.bf16.mxu1 %v497_v0  ;;  %457 = vmatpush3.bf16.msra.mxu0 %v482_v30 }
   0xd   :  { %458 = vmatprep.subr.bf16.mxu0 %v497_v0 }
   0xf   :  { %449 = vmatpush3.bf16.msra.mxu1 %v480_v28  ;;  %v421_v28 = vld [vmem:[%s673_s10] ss:$0 sm:$0xff] }
  0x10   :  { %459 = vmatpush3.bf16.msra.mxu0 %v483_v31  ;;  %v422_v31 = vld [vmem:[%s674_s11] ss:$0 sm:$0xff] }
  0x11   :  { %460 = vmatprep.subr.bf16.mxu0 %v497_v0 }
  0x14   :  { %461 = vmatpush3.bf16.msra.mxu0 %v484_v32 }
  0x15   :  { %462 = vmatprep.subr.bf16.mxu0 %v497_v0 }
  0x18   :  { %463 = vmatpush3.bf16.msra.mxu0 %v485_v33 }
  0x19   :  { %464 = vmatprep.subr.bf16.mxu0 %v497_v0 }
  0x1c   :  { %465 = vmatpush3.bf16.msra.mxu0 %v486_v34 }
  0x1d   :  { %466 = vmatprep.subr.bf16.mxu0 %v497_v0 }
  0x20   :  { %467 = vmatpush3.bf16.msra.mxu0 %v487_v52 }
  0x21   :  { %468 = vmatprep.subr.bf16.mxu0 %v497_v0  ;;  %v412_v0 = vld [vmem:[%s672_s9] ss:$0 sm:$0xff] }
  0x24   :  { %469 = vmatpush3.bf16.msra.mxu0 %v488_v53 }
  0xdd   :  { %v110_v5 = vpop.f32.mrb[0].mxu1 }
  0xde   :  { %v111_v7 = vadd.f32 %v401_v4, %v110_v5  ;;  %v444_v8 = vpop.f32.mrb[1].mxu1 }
  0xdf   :  { %v113_v9 = vpop.f32.mrb[2].mxu1 }
  0xe0   :  { %v114_v11 = vadd.f32 %v401_v4, %v113_v9  ;;  %v445_v12 = vpop.f32.mrb[3].mxu1  ;;  %v119_v13 = vadd.f32 %v117_v6, %v111_v7 }
  0xe2   :  { %v123_v14 = vsel %vm72_vm1, %v119_v13, 0.0  ;;  %v120_v15 = vadd.f32 %v118_v10, %v114_v11 }
  0xe3   :  { %124 = vadd.xlane.f32.xlu0 %v123_v14 }
  0xe4   :  { %v126_v16 = vsel %vm72_vm1, %v120_v15, 0.0 }
  0xe7   :  { %127 = vadd.xlane.f32.xlu0 %v126_v16 }
 0x170   :  { %v125_v17 = vpop.xlane.xlu0 %124 }
 0x171   :  { %v130_v18 = vmul.f32 0.03125, %v125_v17 }
 0x173   :  { %v132_v19 = vsub.f32 %v119_v13, %v130_v18 }
 0x174   :  { %v128_v20 = vpop.xlane.xlu0 %127 }
 0x175   :  { %v131_v21 = vmul.f32 0.03125, %v128_v20  ;;  %v134_v22 = vmul.f32 %v132_v19, %v132_v19 }
 0x177   :  { %v133_v23 = vsub.f32 %v120_v15, %v131_v21  ;;  %v136_v24 = vsel %vm72_vm1, %v134_v22, 0.0 }
 0x178   :  { %137 = vadd.xlane.f32.xlu1 %v136_v24 }
 0x179   :  { %v135_v25 = vmul.f32 %v133_v23, %v133_v23 }
 0x17b   :  { %v139_v26 = vsel %vm72_vm1, %v135_v25, 0.0 }
 0x17c   :  { %140 = vadd.xlane.f32.xlu1 %v139_v26 }
 0x205   :  { %v138_v35 = vpop.xlane.xlu1 %137 }
 0x206   :  { %v142_v36 = vmul.f32 0.03125, %v138_v35 }
 0x208   :  { %v144_v37 = vadd.f32 1e-05, %v142_v36 }
 0x209   :  { %v141_v38 = vpop.xlane.xlu1 %140 }
 0x20a   :  { %489 = vrsqrt.f32 %v144_v37  ;;  %v143_v39 = vmul.f32 0.03125, %v141_v38 }
 0x20c   :  { %v145_v40 = vadd.f32 1e-05, %v143_v39 }
 0x20e   :  { %491 = vrsqrt.f32 %v145_v40 }
 0x214   :  { %v490_v41 = vpop.eup %489 }
 0x215   :  { %v148_v42 = vmul.f32 %v490_v41, %v132_v19 }
 0x217   :  { %v156_v45 = vmul.f32 %v406_v43, %v148_v42 }
 0x218   :  { %v492_v44 = vpop.eup %491 }
 0x219   :  { %v149_v46 = vmul.f32 %v492_v44, %v133_v23  ;;  %v164_v49 = vadd.f32 %v407_v47, %v156_v45 }
 0x21b   :  { %v157_v48 = vmul.f32 %v406_v43, %v149_v46 }
 0x21d   :  { %v165_v50 = vadd.f32 %v407_v47, %v157_v48 }
 0x21f   :  { %v166_v51 = vpack.c.bf16 %v165_v50, %v164_v49 }
 0x221   :  { %451 = vmatmul.mubr.msk.bf16.vlgmr.msra.gmra.mrb[4].mxu1 %vm72_vm1, %v166_v51 }
 0x2f4   :  { %v227_v55 = vpop.f32.mrb[4].mxu1 }
 0x2f5   :  { %v228_v56 = vadd.f32 %v408_v54, %v227_v55  ;;  %v452_v57 = vpop.f32.mrb[5].mxu1 }
 0x2f6   :  { %v230_v58 = vpop.f32.mrb[6].mxu1 }
 0x2f7   :  { %v231_v59 = vadd.f32 %v408_v54, %v230_v58  ;;  %v453_v60 = vpop.f32.mrb[7].mxu1  ;;  %v234_v61 = vmax.f32 %v228_v56, 0.0 }
 0x2f9   :  { %v235_v62 = vmax.f32 %v231_v59, 0.0 }
 0x2fb   :  { %v236_v63 = vpack.c.bf16 %v235_v62, %v234_v61 }
 0x2fd   :  { %471 = vmatmul.mubr.bf16.vlgmr.msra.gmra.mrb[0].mxu0 %v236_v63 }
 0x3d0   :  { %v342_v1 = vpop.f32.mrb[0].mxu0 }
 0x3d1   :  { %v343_v2 = vadd.f32 %v412_v0, %v342_v1  ;;  %v472_v3 = vpop.f32.mrb[1].mxu0 }
 0x3d2   :  { %v345_v4 = vpop.f32.mrb[2].mxu0 }
 0x3d3   :  { %v346_v5 = vadd.f32 %v412_v0, %v345_v4  ;;  %v473_v6 = vpop.f32.mrb[3].mxu0  ;;  %v349_v7 = vadd.f32 %v343_v2, %v164_v49 }
 0x3d5   :  { %v353_v8 = vsel %vm72_vm1, %v349_v7, 0.0  ;;  %v350_v9 = vadd.f32 %v346_v5, %v165_v50 }
 0x3d6   :  { %354 = vadd.xlane.f32.xlu0 %v353_v8 }
 0x3d7   :  { %v356_v10 = vsel %vm72_vm1, %v350_v9, 0.0 }
 0x3d8   :  { %357 = vadd.xlane.f32.xlu1 %v356_v10 }
 0x463   :  { %v355_v11 = vpop.xlane.xlu0 %354 }
 0x464   :  { %v359_v12 = vmul.f32 0.03125, %v355_v11 }
 0x465   :  { %v358_v13 = vpop.xlane.xlu1 %357 }
 0x466   :  { %v361_v14 = vsub.f32 %v349_v7, %v359_v12  ;;  %v360_v15 = vmul.f32 0.03125, %v358_v13 }
 0x468   :  { %v362_v16 = vsub.f32 %v350_v9, %v360_v15  ;;  %v363_v17 = vmul.f32 %v361_v14, %v361_v14 }
 0x46a   :  { %v365_v18 = vsel %vm72_vm1, %v363_v17, 0.0  ;;  %v364_v19 = vmul.f32 %v362_v16, %v362_v16 }
 0x46b   :  { %366 = vadd.xlane.f32.xlu0 %v365_v18 }
 0x46c   :  { %v368_v20 = vsel %vm72_vm1, %v364_v19, 0.0 }
 0x46d   :  { %369 = vadd.xlane.f32.xlu1 %v368_v20 }
 0x4f8   :  { %v367_v21 = vpop.xlane.xlu0 %366 }
 0x4f9   :  { %v371_v22 = vmul.f32 0.03125, %v367_v21 }
 0x4fa   :  { %v370_v23 = vpop.xlane.xlu1 %369 }
 0x4fb   :  { %v373_v24 = vadd.f32 1e-05, %v371_v22  ;;  %v372_v25 = vmul.f32 0.03125, %v370_v23 }
 0x4fd   :  { %493 = vrsqrt.f32 %v373_v24  ;;  %v374_v26 = vadd.f32 1e-05, %v372_v25 }
 0x4ff   :  { %495 = vrsqrt.f32 %v374_v26 }
 0x507   :  { %v494_v27 = vpop.eup %493 }
 0x508   :  { %v377_v29 = vmul.f32 %v494_v27, %v361_v14 }
 0x509   :  { %v496_v30 = vpop.eup %495 }
 0x50a   :  { %v385_v32 = vmul.f32 %v421_v28, %v377_v29  ;;  %v378_v33 = vmul.f32 %v496_v30, %v362_v16 }
 0x50c   :  { %v393_v34 = vadd.f32 %v422_v31, %v385_v32  ;;  %v386_v35 = vmul.f32 %v421_v28, %v378_v33 }
 0x50e   :  { %395 = vst.msk [vmem:[%s675_s12] sm:$0xff] %vm72_vm1, %v393_v34  ;;  %v394_v36 = vadd.f32 %v422_v31, %v386_v35 }
 0x510   :  { %396 = vst.msk [vmem:[%s675_s12 + $0x8] sm:$0xff] %vm72_vm1, %v394_v36 }

// kernel: encoder_forward.17
= control target key start
LH: loop header
LB: loop body
LE: loop exit
PB: predicated region body
PF: predicated region fallthrough
CT: control target
= control target key end

     0   :  { %vm36_vm0 = vcmask 64512   ;;  %v1417_v0 = vmov 0.0   ;;  %vm1418_vm1 = vmmov 0   ;;  %vm19_vm2 = vcmask 7168   ;;  %s1830_s1 = inlined_call_operand.vmem [shape: bf16[8,8,8], index: 1, kind: input, shape index: {}]   ;;  %s1831_s0 = inlined_call_operand.vmem [shape: bf16[8,8,8], index: 0, kind: input, shape index: {}]   ;;  %s1832_s2 = inlined_call_operand.vmem [shape: bf16[8,8,8], index: 2, kind: input, shape index: {}]   ;;  %s1833_s3 = inlined_call_operand.vmem [shape: bf16[8,8,8], index: 3, kind: output, shape index: {}]  }
   0x1   :  { %1267 = vmatprep.subr.bf16.mxu0 %v1417_v0  ;;  %v77_v1 = vld [vmem:[%s1830_s1] sm:$0xf]  ;;  %37 = vst.msk [vmem:[#allocation4] sm:$0xff] %vm36_vm0, %v1417_v0  ;;  %38 = vst.msk [vmem:[#allocation4 + $0x8] sm:$0xff] %vm36_vm0, %v1417_v0  ;;  %1273 = vmatprep.subr.bf16.mxu1 %v1417_v0  ;;  %v78_v2 = vld [vmem:[%s1830_s1 + $0x4] sm:$0xf] }
   0x2   :  { %39 = vst.msk [vmem:[#allocation4 + $0x10] sm:$0xff] %vm36_vm0, %v1417_v0  ;;  %40 = vst.msk [vmem:[#allocation4 + $0x18] sm:$0xff] %vm36_vm0, %v1417_v0  ;;  %v1217_v3 = vld [vmem:[%s1831_s0] sm:$0xff]   ;;  %v90_v4 = vsel %vm36_vm0, %v77_v1, 0  ;;  %v136_v5 = vsel %vm36_vm0, %v78_v2, 0  ;;  %1269 = vmatprep.mubr.msk.bf16.mxu0 %vm1418_vm1, %v1417_v0  ;;  %1275 = vmatprep.mubr.msk.bf16.mxu1 %vm1418_vm1, %v1417_v0  ;;  %v1232_v8 = vld [vmem:[%s1831_s0 + $0x8] sm:$0xff]  }
   0x3   :  { %41 = vst.msk [vmem:[#allocation4 + $0x20] sm:$0xff] %vm36_vm0, %v1417_v0  ;;  %42 = vst.msk [vmem:[#allocation4 + $0x28] sm:$0xff] %vm36_vm0, %v1417_v0  ;;  %v1218_v6 = vunpack.c.l.bf16 %v1217_v3  ;;  %v1219_v7 = vunpack.c.h.bf16 %v1217_v3  ;;  %1268 = vmatpush3.bf16.xpose.msra.mxu0 %v90_v4  ;;  %1274 = vmatpush3.bf16.xpose.msra.mxu1 %v136_v5  ;;  %v79_v11 = vld [vmem:[%s1830_s1 + $0x8] sm:$0xf]  ;;  %v80_v12 = vld [vmem:[%s1830_s1 + $0xc] sm:$0xf]  ;;  %v1222_v15 = vunpack.c.l.bf16 %v1232_v8  ;;  %v1223_v16 = vunpack.c.h.bf16 %v1232_v8 }
   0x4   :  { %43 = vst.msk [vmem:[#allocation4 + $0x30] sm:$0xff] %vm36_vm0, %v1417_v0  ;;  %44 = vst.msk [vmem:[#allocation4 + $0x38] sm:$0xff] %vm36_vm0, %v1417_v0  ;;  %1279 = vmatprep.subr.bf16.mxu0 %v1417_v0  ;;  %1285 = vmatprep.subr.bf16.mxu1 %v1417_v0  ;;  %v182_v17 = vsel %vm36_vm0, %v79_v11, 0  ;;  %v228_v18 = vsel %vm36_vm0, %v80_v12, 0  ;;  %v1233_v21 = vld [vmem:[%s1831_s0 + $0x10] sm:$0xff]   ;;  %v1234_v32 = vld [vmem:[%s1831_s0 + $0x18] sm:$0xff]  }
   0x5   :  { %v61_v9 = vmul.f32 0.35355338, %v1218_v6  ;;  %v62_v10 = vmul.f32 0.35355338, %v1219_v7  ;;  %v63_v19 = vmul.f32 0.35355338, %v1222_v15  ;;  %v1226_v26 = vunpack.c.l.bf16 %v1233_v21 }
   0x6   :  { %v64_v20 = vmul.f32 0.35355338, %v1223_v16  ;;  %v81_v22 = vld [vmem:[%s1830_s1 + $0x10] sm:$0xf]  ;;  %v82_v23 = vld [vmem:[%s1830_s1 + $0x14] sm:$0xf]  ;;  %v1227_v27 = vunpack.c.h.bf16 %v1233_v21  ;;  %v1230_v37 = vunpack.c.l.bf16 %v1234_v32  ;;  %v1231_v38 = vunpack.c.h.bf16 %v1234_v32 }
   0x7   :  { %v69_v13 = vpack.c.bf16 %v61_v9, %v61_v9  ;;  %v70_v14 = vpack.c.bf16 %v62_v10, %v62_v10  ;;  %v71_v24 = vpack.c.bf16 %v63_v19, %v63_v19  ;;  %v274_v28 = vsel %vm36_vm0, %v81_v22, 0  ;;  %v83_v33 = vld [vmem:[%s1830_s1 + $0x18] sm:$0xf]  ;;  %v84_v34 = vld [vmem:[%s1830_s1 + $0x1c] sm:$0xf]  ;;  %28 = vst.msk [vmem:[#allocation3] sm:$0xff] %vm19_vm2, %v1417_v0 }
   0x8   :  { %v72_v25 = vpack.c.bf16 %v64_v20, %v64_v20  ;;  %v320_v29 = vsel %vm36_vm0, %v82_v23, 0  ;;  %v65_v30 = vmul.f32 0.35355338, %v1226_v26  ;;  %v66_v31 = vmul.f32 0.35355338, %v1227_v27  ;;  %29 = vst.msk [vmem:[#allocation3 + $0x8] sm:$0xff] %vm19_vm2, %v1417_v0 }
   0x9   :  { %v366_v39 = vsel %vm36_vm0, %v83_v33, 0  ;;  %v412_v40 = vsel %vm36_vm0, %v84_v34, 0  ;;  %v67_v41 = vmul.f32 0.35355338, %v1230_v37  ;;  %v68_v42 = vmul.f32 0.35355338, %v1231_v38 }
   0xa   :  { %1270 = vmatmul.mubr.msk.bf16.vlgmr.msra.gmra.mrb[0].mxu0 %vm36_vm0, %v69_v13  ;;  %1276 = vmatmul.mubr.msk.bf16.vlgmr.msra.gmra.mrb[0].mxu1 %vm36_vm0, %v70_v14  ;;  %v73_v35 = vpack.c.bf16 %v65_v30, %v65_v30  ;;  %v74_v36 = vpack.c.bf16 %v66_v31, %v66_v31  ;;  %v1419_v45 = vmov -inf   ;;  %30 = vst.msk [vmem:[#allocation3 + $0x10] sm:$0xff] %vm19_vm2, %v1417_v0  ;;  %31 = vst.msk [vmem:[#allocation3 + $0x18] sm:$0xff] %vm19_vm2, %v1417_v0  ;;  %v1420_v9 = vmov 0  }
   0xb   :  { %1280 = vmatpush3.bf16.xpose.msra.mxu0 %v182_v17  ;;  %1286 = vmatpush3.bf16.xpose.msra.mxu1 %v228_v18  ;;  %v75_v43 = vpack.c.bf16 %v67_v41, %v67_v41  ;;  %v76_v44 = vpack.c.bf16 %v68_v42, %v68_v42  ;;  %20 = vst.msk [vmem:[#allocation2] sm:$0xff] %vm19_vm2, %v1419_v45  ;;  %21 = vst.msk [vmem:[#allocation2 + $0x8] sm:$0xff] %vm19_vm2, %v1419_v45  ;;  %v703_v42 = vld [vmem:[%s1832_s2] sm:$0xf]  ;;  %vm714_vm3 = vcmask 1043456   ;;  %vm1187_vm4 = vcmask 60416  }
   0xc   :  { %1281 = vmatprep.mubr.msk.bf16.mxu0 %vm1418_vm1, %v1417_v0  ;;  %1291 = vmatprep.subr.bf16.mxu0 %v1417_v0  ;;  %22 = vst.msk [vmem:[#allocation2 + $0x10] sm:$0xff] %vm19_vm2, %v1419_v45  ;;  %23 = vst.msk [vmem:[#allocation2 + $0x18] sm:$0xff] %vm19_vm2, %v1419_v45 }
   0xd   :  { %1287 = vmatprep.mubr.msk.bf16.mxu1 %vm1418_vm1, %v1417_v0  ;;  %1297 = vmatprep.subr.bf16.mxu1 %v1417_v0  ;;  %24 = vst.msk [vmem:[#allocation2 + $0x20] sm:$0xff] %vm19_vm2, %v1419_v45  ;;  %25 = vst.msk [vmem:[#allocation2 + $0x28] sm:$0xff] %vm19_vm2, %v1419_v45 }
   0xe   :  { %26 = vst.msk [vmem:[#allocation2 + $0x30] sm:$0xff] %vm19_vm2, %v1419_v45  ;;  %27 = vst.msk [vmem:[#allocation2 + $0x38] sm:$0xff] %vm19_vm2, %v1419_v45  ;;  %1367 = vset.pattern.permute.xlu0 %v1420_v9  ;;  %1368 = vset.pattern.permute.xlu1 %v1420_v9  ;;  %v716_v45 = vsel %vm714_vm3, %v703_v42, 0  ;;  %v708_v9 = vld [vmem:[%s1832_s2 + $0x14] sm:$0xf] }
   0xf   :  { %32 = vst.msk [vmem:[#allocation3 + $0x20] sm:$0xff] %vm19_vm2, %v1417_v0  ;;  %33 = vst.msk [vmem:[#allocation3 + $0x28] sm:$0xff] %vm19_vm2, %v1417_v0 }
  0x10   :  { %34 = vst.msk [vmem:[#allocation3 + $0x30] sm:$0xff] %vm19_vm2, %v1417_v0  ;;  %35 = vst.msk [vmem:[#allocation3 + $0x38] sm:$0xff] %vm19_vm2, %v1417_v0 }
  0x12   :  { %1282 = vmatmul.mubr.msk.bf16.vlgmr.msra.gmra.mrb[4].mxu0 %vm36_vm0, %v71_v24  ;;  %1288 = vmatmul.mubr.msk.bf16.vlgmr.msra.gmra.mrb[4].mxu1 %vm36_vm0, %v72_v25  ;;  %v1595_v24 = vld [vmem:[#allocation2] sm:$0xff]  ;;  %v1600_v27 = vld [vmem:[#allocation2 + $0x8] sm:$0xff] }
  0x13   :  { %1292 = vmatpush3.bf16.xpose.msra.mxu0 %v274_v28  ;;  %1298 = vmatpush3.bf16.xpose.msra.mxu1 %v320_v29  ;;  %v1610_v31 = vld [vmem:[#allocation2 + $0x10] sm:$0xff] }
  0x14   :  { %1293 = vmatprep.mubr.msk.bf16.mxu0 %vm1418_vm1, %v1417_v0  ;;  %1303 = vmatprep.subr.bf16.mxu0 %v1417_v0 }
  0x15   :  { %1299 = vmatprep.mubr.msk.bf16.mxu1 %vm1418_vm1, %v1417_v0  ;;  %1309 = vmatprep.subr.bf16.mxu1 %v1417_v0 }
  0x1a   :  { %1294 = vmatmul.mubr.msk.bf16.vlgmr.msra.gmra.mrb[8].mxu0 %vm36_vm0, %v73_v35  ;;  %1300 = vmatmul.mubr.msk.bf16.vlgmr.msra.gmra.mrb[8].mxu1 %vm36_vm0, %v74_v36  ;;  %v1620_v35 = vld [vmem:[#allocation2 + $0x18] sm:$0xff] }
  0x1b   :  { %1304 = vmatpush3.bf16.xpose.msra.mxu0 %v366_v39  ;;  %1310 = vmatpush3.bf16.xpose.msra.mxu1 %v412_v40  ;;  %v1630_v39 = vld [vmem:[#allocation2 + $0x20] sm:$0xff]  ;;  %v1632_v40 = vld [vmem:[#allocation2 + $0x28] sm:$0xff] }
  0x1c   :  { %1305 = vmatprep.mubr.msk.bf16.mxu0 %vm1418_vm1, %v1417_v0  ;;  %1311 = vmatprep.mubr.msk.bf16.mxu1 %vm1418_vm1, %v1417_v0 }
  0x1d   :  { %1315 = vmatprep.subr.bf16.mxu0 %v1417_v0  ;;  %1321 = vmatprep.subr.bf16.mxu1 %v1417_v0 }
  0x22   :  { %1306 = vmatmul.mubr.msk.bf16.vlgmr.msra.gmra.mrb[12].mxu0 %vm36_vm0, %v75_v43  ;;  %1312 = vmatmul.mubr.msk.bf16.vlgmr.msra.gmra.mrb[12].mxu1 %vm36_vm0, %v76_v44 }
  0x23   :  { %1317 = vmatprep.mubr.msk.bf16.mxu0 %vm1418_vm1, %v1417_v0  ;;  %1323 = vmatprep.mubr.msk.bf16.mxu1 %vm1418_vm1, %v1417_v0 }
  0x24   :  { %1316 = vmatpush3.bf16.msra.mxu0 %v716_v45 }
  0x25   :  { %1327 = vmatprep.subr.bf16.mxu0 %v1417_v0 }
  0xdd   :  { %v1563_v46 = vpop.f32.mrb[0].mxu0  ;;  %v1565_v47 = vpop.f32.mrb[0].mxu1 }
  0xde   :  { %v1271_v48 = vpop.f32.mrb[1].mxu0  ;;  %v462_v49 = vsel %vm36_vm0, %v1563_v46, -inf  ;;  %v1277_v50 = vpop.f32.mrb[1].mxu1  ;;  %v465_v55 = vsel %vm36_vm0, %v1565_v47, -inf }
  0xdf   :  { %463 = vmax.xlane.f32.xlu0 %v462_v49  ;;  %v129_v51 = vpop.f32.mrb[2].mxu0  ;;  %v175_v52 = vpop.f32.mrb[2].mxu1 }
  0xe0   :  { %v1272_v53 = vpop.f32.mrb[3].mxu0  ;;  %v1278_v54 = vpop.f32.mrb[3].mxu1  ;;  %v704_v52 = vld [vmem:[%s1832_s2 + $0x4] sm:$0xf] }
  0xe1   :  { %v762_v53 = vsel %vm714_vm3, %v704_v52, 0  ;;  %v1663_v54 = vld [vmem:[#allocation2 + $0x30] sm:$0xff] }
  0xe2   :  { %1322 = vmatpush3.bf16.msra.mxu1 %v762_v53 }
  0xe3   :  { %466 = vmax.xlane.f32.xlu0 %v465_v55  ;;  %v1665_v55 = vld [vmem:[#allocation2 + $0x38] sm:$0xff]  ;;  %1333 = vmatprep.subr.bf16.mxu1 %v1417_v0 }
  0xe5   :  { %v1571_v56 = vpop.f32.mrb[4].mxu0  ;;  %v1573_v57 = vpop.f32.mrb[4].mxu1 }
  0xe6   :  { %v1283_v58 = vpop.f32.mrb[5].mxu0  ;;  %v468_v59 = vsel %vm36_vm0, %v1571_v56, -inf  ;;  %v1289_v60 = vpop.f32.mrb[5].mxu1  ;;  %v471_v2 = vsel %vm36_vm0, %v1573_v57, -inf }
  0xe7   :  { %469 = vmax.xlane.f32.xlu1 %v468_v59  ;;  %v221_v61 = vpop.f32.mrb[6].mxu0  ;;  %v267_v62 = vpop.f32.mrb[6].mxu1  ;;  %v705_v58 = vld [vmem:[%s1832_s2 + $0x8] sm:$0xf] }
  0xe8   :  { %v1284_v63 = vpop.f32.mrb[7].mxu0  ;;  %v1290_v1 = vpop.f32.mrb[7].mxu1  ;;  %v808_v61 = vsel %vm714_vm3, %v705_v58, 0 }
  0xeb   :  { %472 = vmax.xlane.f32.xlu1 %v471_v2 }
  0xed   :  { %v1579_v3 = vpop.f32.mrb[8].mxu0  ;;  %v1581_v4 = vpop.f32.mrb[8].mxu1 }
  0xee   :  { %v1295_v5 = vpop.f32.mrb[9].mxu0  ;;  %v474_v6 = vsel %vm36_vm0, %v1579_v3, -inf  ;;  %v1301_v7 = vpop.f32.mrb[9].mxu1  ;;  %v477_v8 = vsel %vm36_vm0, %v1581_v4, -inf }
  0xef   :  { %475 = vmax.xlane.f32.xlu0 %v474_v6  ;;  %v313_v10 = vpop.f32.mrb[10].mxu0  ;;  %v359_v11 = vpop.f32.mrb[10].mxu1  ;;  %478 = vmax.xlane.f32.xlu1 %v477_v8  ;;  %v706_v5 = vld [vmem:[%s1832_s2 + $0xc] sm:$0xf]  ;;  %v707_v7 = vld [vmem:[%s1832_s2 + $0x10] sm:$0xf] }
  0xf0   :  { %v1296_v12 = vpop.f32.mrb[11].mxu0  ;;  %v1302_v13 = vpop.f32.mrb[11].mxu1  ;;  %v854_v6 = vsel %vm714_vm3, %v706_v5, 0  ;;  %v900_v8 = vsel %vm714_vm3, %v707_v7, 0  ;;  %v1701_v10 = vsel %vm714_vm3, %v708_v9, 0 }
  0xf1   :  { %v709_v11 = vld [vmem:[%s1832_s2 + $0x18] sm:$0xf]  ;;  %v710_v13 = vld [vmem:[%s1832_s2 + $0x1c] sm:$0xf] }
  0xf2   :  { %v1707_v12 = vsel %vm714_vm3, %v709_v11, 0 }
  0xf5   :  { %v1587_v14 = vpop.f32.mrb[12].mxu0  ;;  %v1589_v15 = vpop.f32.mrb[12].mxu1 }
  0xf6   :  { %v1307_v16 = vpop.f32.mrb[13].mxu0  ;;  %v480_v17 = vsel %vm36_vm0, %v1587_v14, -inf  ;;  %v1313_v18 = vpop.f32.mrb[13].mxu1  ;;  %v483_v19 = vsel %vm36_vm0, %v1589_v15, -inf }
  0xf7   :  { %481 = vmax.xlane.f32.xlu0 %v480_v17  ;;  %v405_v20 = vpop.f32.mrb[14].mxu0  ;;  %v451_v21 = vpop.f32.mrb[14].mxu1  ;;  %484 = vmax.xlane.f32.xlu1 %v483_v19  ;;  %v1713_v16 = vsel %vm714_vm3, %v710_v13, 0 }
  0xf8   :  { %v1308_v22 = vpop.f32.mrb[15].mxu0  ;;  %v1314_v23 = vpop.f32.mrb[15].mxu1 }
 0x16c   :  { %v464_v25 = vpop.xlane.xlu0 %463 }
 0x16d   :  { %v1598_v26 = vmax.f32 %v1595_v24, %v464_v25 }
 0x16f   :  { %v494_v28 = vsub.f32 %v1595_v24, %v1598_v26  ;;  %1096 = vst.msk [vmem:[#allocation2] sm:$0xff] %vm19_vm2, %v1598_v26  ;;  %520 = vperm.xlu0 %1367, %v1598_v26  }
 0x170   :  { %v467_v29 = vpop.xlane.xlu0 %466 }
 0x171   :  { %v1608_v30 = vmax.f32 %v1600_v27, %v467_v29 }
 0x173   :  { %v495_v32 = vsub.f32 %v1600_v27, %v1608_v30  ;;  %1097 = vst.msk [vmem:[#allocation2 + $0x8] sm:$0xff] %vm19_vm2, %v1608_v30  ;;  %525 = vperm.xlu1 %1368, %v1608_v30  }
 0x174   :  { %v470_v33 = vpop.xlane.xlu1 %469 }
 0x175   :  { %v1618_v34 = vmax.f32 %v1610_v31, %v470_v33 }
 0x177   :  { %v496_v36 = vsub.f32 %v1610_v31, %v1618_v34  ;;  %1098 = vst.msk [vmem:[#allocation2 + $0x10] sm:$0xff] %vm19_vm2, %v1618_v34  ;;  %530 = vperm.xlu1 %1368, %v1618_v34  }
 0x178   :  { %v473_v37 = vpop.xlane.xlu1 %472 }
 0x179   :  { %v1628_v38 = vmax.f32 %v1620_v35, %v473_v37 }
 0x17b   :  { %v497_v41 = vsub.f32 %v1620_v35, %v1628_v38  ;;  %1099 = vst.msk [vmem:[#allocation2 + $0x18] sm:$0xff] %vm19_vm2, %v1628_v38  ;;  %535 = vperm.xlu1 %1368, %v1628_v38  }
 0x17c   :  { %v476_v43 = vpop.xlane.xlu0 %475  ;;  %v479_v44 = vpop.xlane.xlu1 %478 }
 0x17d   :  { %v1644_v48 = vmax.f32 %v1630_v39, %v476_v43  ;;  %v1647_v49 = vmax.f32 %v1632_v40, %v479_v44 }
 0x17f   :  { %v498_v50 = vsub.f32 %v1630_v39, %v1644_v48  ;;  %1100 = vst.msk [vmem:[#allocation2 + $0x20] sm:$0xff] %vm19_vm2, %v1644_v48  ;;  %540 = vperm.xlu1 %1368, %v1644_v48   ;;  %v499_v51 = vsub.f32 %v1632_v40, %v1647_v49  ;;  %1101 = vst.msk [vmem:[#allocation2 + $0x28] sm:$0xff] %vm19_vm2, %v1647_v49  ;;  %v582_v40 = vld [vmem:[#allocation3] sm:$0xff] }
 0x181   :  { %v510_v27 = vmul.f32 1.442695, %v498_v50  ;;  %v512_v24 = vmul.f32 1.442695, %v499_v51 }
 0x183   :  { %545 = vperm.xlu1 %1368, %v1647_v49   ;;  %v583_v49 = vld [vmem:[#allocation3 + $0x8] sm:$0xff] }
 0x184   :  { %v482_v59 = vpop.xlane.xlu0 %481  ;;  %v485_v60 = vpop.xlane.xlu1 %484 }
 0x185   :  { %v1674_v62 = vmax.f32 %v1663_v54, %v482_v59  ;;  %v1677_v63 = vmax.f32 %v1665_v55, %v485_v60 }
 0x187   :  { %v500_v1 = vsub.f32 %v1663_v54, %v1674_v62  ;;  %1102 = vst.msk [vmem:[#allocation2 + $0x30] sm:$0xff] %vm19_vm2, %v1674_v62  ;;  %550 = vperm.xlu1 %1368, %v1674_v62   ;;  %v501_v2 = vsub.f32 %v1665_v55, %v1677_v63  ;;  %1103 = vst.msk [vmem:[#allocation2 + $0x38] sm:$0xff] %vm19_vm2, %v1677_v63  ;;  %v584_v55 = vld [vmem:[#allocation3 + $0x10] sm:$0xff] }
 0x189   :  { %v514_v26 = vmul.f32 1.442695, %v500_v1 }
 0x18b   :  { %555 = vperm.xlu1 %1368, %v1677_v63  }
 0x1ee   :  { %v521_v17 = vpop.permute.xlu0 %520 }
 0x1ef   :  { %v558_v18 = vsub.f32 %v1563_v46, %v521_v17 }
 0x1f1   :  { %v566_v19 = vmul.f32 1.442695, %v558_v18 }
 0x1f2   :  { %v526_v20 = vpop.permute.xlu1 %525 }
 0x1f3   :  { %1369 = vpow2.f32 %v566_v19  ;;  %v559_v21 = vsub.f32 %v1565_v47, %v526_v20 }
 0x1f5   :  { %v568_v22 = vmul.f32 1.442695, %v559_v21 }
 0x1f6   :  { %v531_v23 = vpop.permute.xlu1 %530 }
 0x1f7   :  { %1371 = vpow2.f32 %v568_v22  ;;  %v560_v25 = vsub.f32 %v1571_v56, %v531_v23 }
 0x1f9   :  { %v570_v29 = vmul.f32 1.442695, %v560_v25 }
 0x1fa   :  { %v536_v33 = vpop.permute.xlu1 %535 }
 0x1fb   :  { %1373 = vpow2.f32 %v570_v29  ;;  %v561_v37 = vsub.f32 %v1573_v57, %v536_v33 }
 0x1fd   :  { %v1370_v42 = vpop.eup %1369  ;;  %v572_v43 = vmul.f32 1.442695, %v561_v37  ;;  %v506_v37 = vmul.f32 1.442695, %v496_v36 }
 0x1fe   :  { %v541_v44 = vpop.permute.xlu1 %540  ;;  %v598_v46 = vsel %vm36_vm0, %v1370_v42, 0.0  ;;  %v695_v45 = vpack.c.bf16 %v1370_v42, %v1370_v42  ;;  %v508_v42 = vmul.f32 1.442695, %v497_v41 }
 0x1ff   :  { %1375 = vpow2.f32 %v572_v43  ;;  %v562_v52 = vsub.f32 %v1579_v3, %v541_v44  ;;  %599 = vadd.xlane.f32.xlu1 %v598_v46 }
 0x200   :  { %1318 = vmatmul.mubr.msk.bf16.vlgmr.msra.gmra.mrb[16].mxu0 %vm36_vm0, %v695_v45 }
 0x201   :  { %v1372_v47 = vpop.eup %1371  ;;  %v574_v53 = vmul.f32 1.442695, %v562_v52  ;;  %1328 = vmatpush3.bf16.msra.mxu0 %v808_v61  ;;  %1329 = vmatprep.mubr.msk.bf16.mxu0 %vm1418_vm1, %v1417_v0  ;;  %v586_v52 = vld [vmem:[#allocation3 + $0x20] sm:$0xff] }
 0x202   :  { %v546_v56 = vpop.permute.xlu1 %545  ;;  %v601_v57 = vsel %vm36_vm0, %v1372_v47, 0.0  ;;  %v696_v58 = vpack.c.bf16 %v1372_v47, %v1372_v47  ;;  %1339 = vmatprep.subr.bf16.mxu0 %v1417_v0 }
 0x203   :  { %1377 = vpow2.f32 %v574_v53  ;;  %v563_v59 = vsub.f32 %v1581_v4, %v546_v56  ;;  %602 = vadd.xlane.f32.xlu0 %v601_v57 }
 0x204   :  { %1324 = vmatmul.mubr.msk.bf16.vlgmr.msra.gmra.mrb[16].mxu1 %vm36_vm0, %v696_v58  ;;  %v587_v58 = vld [vmem:[#allocation3 + $0x28] sm:$0xff] }
 0x205   :  { %v1374_v3 = vpop.eup %1373  ;;  %v576_v60 = vmul.f32 1.442695, %v563_v59  ;;  %1334 = vmatpush3.bf16.msra.mxu1 %v854_v6  ;;  %1335 = vmatprep.mubr.msk.bf16.mxu1 %vm1418_vm1, %v1417_v0 }
 0x206   :  { %v551_v61 = vpop.permute.xlu1 %550  ;;  %v604_v5 = vsel %vm36_vm0, %v1374_v3, 0.0  ;;  %v697_v7 = vpack.c.bf16 %v1374_v3, %v1374_v3  ;;  %1345 = vmatprep.subr.bf16.mxu1 %v1417_v0 }
 0x207   :  { %1379 = vpow2.f32 %v576_v60  ;;  %v564_v9 = vsub.f32 %v1587_v14, %v551_v61  ;;  %605 = vadd.xlane.f32.xlu0 %v604_v5  ;;  %v588_v5 = vld [vmem:[#allocation3 + $0x30] sm:$0xff] }
 0x208   :  { %1330 = vmatmul.mubr.msk.bf16.vlgmr.msra.gmra.mrb[20].mxu0 %vm36_vm0, %v697_v7 }
 0x209   :  { %v1376_v4 = vpop.eup %1375  ;;  %v578_v11 = vmul.f32 1.442695, %v564_v9  ;;  %1340 = vmatpush3.bf16.msra.mxu0 %v900_v8  ;;  %1341 = vmatprep.mubr.msk.bf16.mxu0 %vm1418_vm1, %v1417_v0 }
 0x20a   :  { %v556_v6 = vpop.permute.xlu1 %555  ;;  %v607_v13 = vsel %vm36_vm0, %v1376_v4, 0.0  ;;  %v698_v17 = vpack.c.bf16 %v1376_v4, %v1376_v4  ;;  %1351 = vmatprep.subr.bf16.mxu0 %v1417_v0 }
 0x20b   :  { %1381 = vpow2.f32 %v578_v11  ;;  %v565_v18 = vsub.f32 %v1589_v15, %v556_v6  ;;  %608 = vadd.xlane.f32.xlu1 %v607_v13  ;;  %v589_v13 = vld [vmem:[#allocation3 + $0x38] sm:$0xff] }
 0x20c   :  { %1336 = vmatmul.mubr.msk.bf16.vlgmr.msra.gmra.mrb[20].mxu1 %vm36_vm0, %v698_v17 }
 0x20d   :  { %v1378_v14 = vpop.eup %1377  ;;  %v580_v19 = vmul.f32 1.442695, %v565_v18  ;;  %1346 = vmatpush3.bf16.msra.mxu1 %v1701_v10  ;;  %1347 = vmatprep.mubr.msk.bf16.mxu1 %vm1418_vm1, %v1417_v0 }
 0x20e   :  { %v610_v8 = vsel %vm36_vm0, %v1378_v14, 0.0  ;;  %v699_v20 = vpack.c.bf16 %v1378_v14, %v1378_v14  ;;  %1357 = vmatprep.subr.bf16.mxu1 %v1417_v0 }
 0x20f   :  { %1383 = vpow2.f32 %v580_v19  ;;  %611 = vadd.xlane.f32.xlu0 %v610_v8 }
 0x210   :  { %1342 = vmatmul.mubr.msk.bf16.vlgmr.msra.gmra.mrb[24].mxu0 %vm36_vm0, %v699_v20 }
 0x211   :  { %v1380_v15 = vpop.eup %1379  ;;  %1352 = vmatpush3.bf16.msra.mxu0 %v1707_v12  ;;  %1353 = vmatprep.mubr.msk.bf16.mxu0 %vm1418_vm1, %v1417_v0 }
 0x212   :  { %v613_v10 = vsel %vm36_vm0, %v1380_v15, 0.0  ;;  %v700_v21 = vpack.c.bf16 %v1380_v15, %v1380_v15 }
 0x213   :  { %614 = vadd.xlane.f32.xlu1 %v613_v10 }
 0x214   :  { %1348 = vmatmul.mubr.msk.bf16.vlgmr.msra.gmra.mrb[24].mxu1 %vm36_vm0, %v700_v21 }
 0x215   :  { %v1382_v22 = vpop.eup %1381  ;;  %1358 = vmatpush3.bf16.msra.mxu1 %v1713_v16  ;;  %1359 = vmatprep.mubr.msk.bf16.mxu1 %vm1418_vm1, %v1417_v0  ;;  %v504_v16 = vmul.f32 1.442695, %v495_v32  ;;  %v502_v0 = vmul.f32 1.442695, %v494_v28  ;;  %v516_v28 = vmul.f32 1.442695, %v501_v2 }
 0x216   :  { %v616_v23 = vsel %vm36_vm0, %v1382_v22, 0.0  ;;  %v701_v25 = vpack.c.bf16 %v1382_v22, %v1382_v22  ;;  %v585_v2 = vld [vmem:[#allocation3 + $0x18] sm:$0xff] }
 0x217   :  { %617 = vadd.xlane.f32.xlu0 %v616_v23  ;;  %1385 = vpow2.f32 %v504_v16  ;;  %v639_v16 = vld [vmem:[#allocation4] sm:$0xff] }
 0x218   :  { %1354 = vmatmul.mubr.msk.bf16.vlgmr.msra.gmra.mrb[28].mxu0 %vm36_vm0, %v701_v25  ;;  %1387 = vpow2.f32 %v502_v0 }
 0x219   :  { %v1384_v12 = vpop.eup %1383  ;;  %1389 = vpow2.f32 %v506_v37 }
 0x21a   :  { %v619_v29 = vsel %vm36_vm0, %v1384_v12, 0.0  ;;  %v702_v33 = vpack.c.bf16 %v1384_v12, %v1384_v12  ;;  %1391 = vpow2.f32 %v508_v42 }
 0x21b   :  { %620 = vadd.xlane.f32.xlu1 %v619_v29  ;;  %1393 = vpow2.f32 %v510_v27  ;;  %v640_v27 = vld [vmem:[#allocation4 + $0x8] sm:$0xff] }
 0x21c   :  { %1360 = vmatmul.mubr.msk.bf16.vlgmr.msra.gmra.mrb[28].mxu1 %vm36_vm0, %v702_v33  ;;  %1395 = vpow2.f32 %v512_v24 }
 0x21d   :  { %1397 = vpow2.f32 %v514_v26 }
 0x21e   :  { %1399 = vpow2.f32 %v516_v28 }
 0x221   :  { %v1386_v30 = vpop.eup %1385 }
 0x222   :  { %v1388_v31 = vpop.eup %1387  ;;  %v591_v51 = vmul.f32 %v1386_v30, %v583_v49  ;;  %v642_v49 = vld [vmem:[#allocation4 + $0x18] sm:$0xff] }
 0x223   :  { %v1390_v32 = vpop.eup %1389  ;;  %v590_v41 = vmul.f32 %v1388_v31, %v582_v40 }
 0x224   :  { %v1392_v34 = vpop.eup %1391  ;;  %v592_v63 = vmul.f32 %v1390_v32, %v584_v55 }
 0x225   :  { %v1394_v35 = vpop.eup %1393  ;;  %v593_v46 = vmul.f32 %v1392_v34, %v585_v2  ;;  %v643_v2 = vld [vmem:[#allocation4 + $0x20] sm:$0xff] }
 0x226   :  { %v1396_v36 = vpop.eup %1395  ;;  %v594_v56 = vmul.f32 %v1394_v35, %v586_v52 }
 0x227   :  { %v1398_v38 = vpop.eup %1397  ;;  %v595_v60 = vmul.f32 %v1396_v36, %v587_v58 }
 0x228   :  { %v1400_v39 = vpop.eup %1399  ;;  %v596_v11 = vmul.f32 %v1398_v38, %v588_v5 }
 0x229   :  { %v597_v19 = vmul.f32 %v1400_v39, %v589_v13 }
 0x22c   :  { %654 = vperm.xlu1 %1368, %v1386_v30  }
 0x22d   :  { %649 = vperm.xlu0 %1367, %v1388_v31  }
 0x230   :  { %659 = vperm.xlu1 %1368, %v1390_v32  }
 0x231   :  { %664 = vperm.xlu0 %1367, %v1392_v34   ;;  %v641_v34 = vld [vmem:[#allocation4 + $0x10] sm:$0xff] }
 0x234   :  { %669 = vperm.xlu1 %1368, %v1394_v35  }
 0x235   :  { %674 = vperm.xlu0 %1367, %v1396_v36  }
 0x238   :  { %679 = vperm.xlu1 %1368, %v1398_v38  }
 0x239   :  { %684 = vperm.xlu0 %1367, %v1400_v39  }
 0x28c   :  { %v600_v48 = vpop.xlane.xlu1 %599 }
 0x28d   :  { %v622_v50 = vadd.f32 %v600_v48, %v590_v41 }
 0x28f   :  { %631 = vst.msk [vmem:[#allocation3] sm:$0xff] %vm19_vm2, %v622_v50 }
 0x290   :  { %v603_v54 = vpop.xlane.xlu0 %602 }
 0x291   :  { %v623_v62 = vadd.f32 %v603_v54, %v591_v51 }
 0x293   :  { %632 = vst.msk [vmem:[#allocation3 + $0x8] sm:$0xff] %vm19_vm2, %v623_v62 }
 0x294   :  { %v606_v1 = vpop.xlane.xlu0 %605 }
 0x295   :  { %v624_v43 = vadd.f32 %v606_v1, %v592_v63 }
 0x296   :  { %v1115_v44 = vld [vmem:[#allocation3] sm:$0xff] }
 0x297   :  { %633 = vst.msk [vmem:[#allocation3 + $0x10] sm:$0xff] %vm19_vm2, %v624_v43  ;;  %1401 = vrcp.f32 %v1115_v44 }
 0x298   :  { %v609_v45 = vpop.xlane.xlu1 %608 }
 0x299   :  { %v625_v47 = vadd.f32 %v609_v45, %v593_v46 }
 0x29a   :  { %v1116_v53 = vld [vmem:[#allocation3 + $0x8] sm:$0xff] }
 0x29b   :  { %634 = vst.msk [vmem:[#allocation3 + $0x18] sm:$0xff] %vm19_vm2, %v625_v47  ;;  %1403 = vrcp.f32 %v1116_v53 }
 0x29c   :  { %v612_v57 = vpop.xlane.xlu0 %611 }
 0x29d   :  { %v626_v59 = vadd.f32 %v612_v57, %v594_v56  ;;  %v644_v56 = vld [vmem:[#allocation4 + $0x28] sm:$0xff] }
 0x29e   :  { %v1117_v3 = vld [vmem:[#allocation3 + $0x10] sm:$0xff] }
 0x29f   :  { %635 = vst.msk [vmem:[#allocation3 + $0x20] sm:$0xff] %vm19_vm2, %v626_v59  ;;  %1405 = vrcp.f32 %v1117_v3 }
 0x2a0   :  { %v615_v61 = vpop.xlane.xlu1 %614 }
 0x2a1   :  { %v1402_v7 = vpop.eup %1401  ;;  %v627_v9 = vadd.f32 %v615_v61, %v595_v60 }
 0x2a2   :  { %1133 = vperm.xlu1 %1368, %v1402_v7   ;;  %v1118_v4 = vld [vmem:[#allocation3 + $0x18] sm:$0xff]  ;;  %v645_v7 = vld [vmem:[#allocation4 + $0x30] sm:$0xff] }
 0x2a3   :  { %636 = vst.msk [vmem:[#allocation3 + $0x28] sm:$0xff] %vm19_vm2, %v627_v9  ;;  %1407 = vrcp.f32 %v1118_v4 }
 0x2a4   :  { %v618_v6 = vpop.xlane.xlu0 %617 }
 0x2a5   :  { %v1404_v17 = vpop.eup %1403  ;;  %v628_v18 = vadd.f32 %v618_v6, %v596_v11 }
 0x2a6   :  { %1138 = vperm.xlu0 %1367, %v1404_v17   ;;  %v1119_v14 = vld [vmem:[#allocation3 + $0x20] sm:$0xff] }
 0x2a7   :  { %637 = vst.msk [vmem:[#allocation3 + $0x30] sm:$0xff] %vm19_vm2, %v628_v18  ;;  %1409 = vrcp.f32 %v1119_v14  ;;  %v646_v14 = vld [vmem:[#allocation4 + $0x38] sm:$0xff] }
 0x2a8   :  { %v621_v8 = vpop.xlane.xlu1 %620 }
 0x2a9   :  { %v1406_v20 = vpop.eup %1405  ;;  %v629_v15 = vadd.f32 %v621_v8, %v597_v19 }
 0x2aa   :  { %1143 = vperm.xlu1 %1368, %v1406_v20   ;;  %v1120_v10 = vld [vmem:[#allocation3 + $0x28] sm:$0xff] }
 0x2ab   :  { %638 = vst.msk [vmem:[#allocation3 + $0x38] sm:$0xff] %vm19_vm2, %v629_v15  ;;  %1411 = vrcp.f32 %v1120_v10 }
 0x2ac   :  { %v650_v0 = vpop.permute.xlu0 %649  ;;  %v655_v37 = vpop.permute.xlu1 %654 }
 0x2ad   :  { %v1408_v21 = vpop.eup %1407  ;;  %v687_v42 = vmul.f32 %v650_v0, %v639_v16  ;;  %v688_v31 = vmul.f32 %v655_v37, %v640_v27 }
 0x2ae   :  { %1148 = vperm.xlu0 %1367, %v1408_v21   ;;  %v1121_v22 = vld [vmem:[#allocation3 + $0x30] sm:$0xff] }
 0x2af   :  { %1413 = vrcp.f32 %v1121_v22 }
 0x2b0   :  { %v660_v35 = vpop.permute.xlu1 %659  ;;  %v665_v50 = vpop.permute.xlu0 %664 }
 0x2b1   :  { %v1410_v23 = vpop.eup %1409  ;;  %v689_v41 = vmul.f32 %v660_v35, %v641_v34  ;;  %v690_v63 = vmul.f32 %v665_v50, %v642_v49 }
 0x2b2   :  { %1153 = vperm.xlu1 %1368, %v1410_v23   ;;  %v1122_v25 = vld [vmem:[#allocation3 + $0x38] sm:$0xff] }
 0x2b3   :  { %1415 = vrcp.f32 %v1122_v25 }
 0x2b4   :  { %v670_v43 = vpop.permute.xlu1 %669  ;;  %v675_v57 = vpop.permute.xlu0 %674 }
 0x2b5   :  { %v1412_v12 = vpop.eup %1411  ;;  %v691_v47 = vmul.f32 %v670_v43, %v643_v2  ;;  %v692_v61 = vmul.f32 %v675_v57, %v644_v56 }
 0x2b6   :  { %1158 = vperm.xlu0 %1367, %v1412_v12  }
 0x2b8   :  { %v680_v9 = vpop.permute.xlu1 %679  ;;  %v685_v19 = vpop.permute.xlu0 %684 }
 0x2b9   :  { %v1414_v29 = vpop.eup %1413  ;;  %v693_v17 = vmul.f32 %v680_v9, %v645_v7  ;;  %v694_v21 = vmul.f32 %v685_v19, %v646_v14 }
 0x2ba   :  { %1163 = vperm.xlu1 %1368, %v1414_v29  }
 0x2bd   :  { %v1416_v33 = vpop.eup %1415 }
 0x2be   :  { %1168 = vperm.xlu0 %1367, %v1416_v33  }
 0x2d3   :  { %v752_v24 = vpop.f32.mrb[16].mxu0 }
 0x2d4   :  { %v1080_v26 = vadd.f32 %v752_v24, %v687_v42  ;;  %v1319_v28 = vpop.f32.mrb[17].mxu0 }
 0x2d5   :  { %v755_v30 = vpop.f32.mrb[18].mxu0 }
 0x2d6   :  { %1088 = vst.msk [vmem:[#allocation4] sm:$0xff] %vm36_vm0, %v1080_v26  ;;  %v1320_v32 = vpop.f32.mrb[19].mxu0 }
 0x2d7   :  { %v798_v36 = vpop.f32.mrb[16].mxu1 }
 0x2d8   :  { %v1081_v38 = vadd.f32 %v798_v36, %v688_v31  ;;  %v1325_v39 = vpop.f32.mrb[17].mxu1 }
 0x2d9   :  { %v801_v40 = vpop.f32.mrb[18].mxu1 }
 0x2da   :  { %1089 = vst.msk [vmem:[#allocation4 + $0x8] sm:$0xff] %vm36_vm0, %v1081_v38  ;;  %v1326_v48 = vpop.f32.mrb[19].mxu1 }
 0x2db   :  { %v844_v51 = vpop.f32.mrb[20].mxu0 }
 0x2dc   :  { %v1082_v54 = vadd.f32 %v844_v51, %v689_v41  ;;  %v1331_v55 = vpop.f32.mrb[21].mxu0 }
 0x2dd   :  { %v847_v62 = vpop.f32.mrb[22].mxu0  ;;  %v1107_v0 = vld [vmem:[#allocation4] sm:$0xff] }
 0x2de   :  { %1090 = vst.msk [vmem:[#allocation4 + $0x10] sm:$0xff] %vm36_vm0, %v1082_v54  ;;  %v1332_v1 = vpop.f32.mrb[23].mxu0 }
 0x2df   :  { %v890_v44 = vpop.f32.mrb[20].mxu1 }
 0x2e0   :  { %v1083_v46 = vadd.f32 %v890_v44, %v690_v63  ;;  %v1337_v45 = vpop.f32.mrb[21].mxu1 }
 0x2e1   :  { %v893_v52 = vpop.f32.mrb[22].mxu1  ;;  %v1108_v27 = vld [vmem:[#allocation4 + $0x8] sm:$0xff] }
 0x2e2   :  { %1091 = vst.msk [vmem:[#allocation4 + $0x18] sm:$0xff] %vm36_vm0, %v1083_v46  ;;  %v1338_v53 = vpop.f32.mrb[23].mxu1 }
 0x2e3   :  { %v936_v58 = vpop.f32.mrb[24].mxu0 }
 0x2e4   :  { %v1084_v59 = vadd.f32 %v936_v58, %v691_v47  ;;  %v1343_v3 = vpop.f32.mrb[25].mxu0 }
 0x2e5   :  { %v939_v60 = vpop.f32.mrb[26].mxu0  ;;  %v1109_v31 = vld [vmem:[#allocation4 + $0x10] sm:$0xff] }
 0x2e6   :  { %1092 = vst.msk [vmem:[#allocation4 + $0x20] sm:$0xff] %vm36_vm0, %v1084_v59  ;;  %v1344_v5 = vpop.f32.mrb[27].mxu0 }
 0x2e7   :  { %v982_v4 = vpop.f32.mrb[24].mxu1 }
 0x2e8   :  { %v1085_v11 = vadd.f32 %v982_v4, %v692_v61  ;;  %v1349_v6 = vpop.f32.mrb[25].mxu1 }
 0x2e9   :  { %v985_v13 = vpop.f32.mrb[26].mxu1  ;;  %v1110_v35 = vld [vmem:[#allocation4 + $0x18] sm:$0xff] }
 0x2ea   :  { %1093 = vst.msk [vmem:[#allocation4 + $0x28] sm:$0xff] %vm36_vm0, %v1085_v11  ;;  %v1350_v18 = vpop.f32.mrb[27].mxu1 }
 0x2eb   :  { %v1028_v8 = vpop.f32.mrb[28].mxu0 }
 0x2ec   :  { %v1086_v20 = vadd.f32 %v1028_v8, %v693_v17  ;;  %v1355_v15 = vpop.f32.mrb[29].mxu0 }
 0x2ed   :  { %v1031_v10 = vpop.f32.mrb[30].mxu0  ;;  %v1111_v41 = vld [vmem:[#allocation4 + $0x20] sm:$0xff] }
 0x2ee   :  { %1094 = vst.msk [vmem:[#allocation4 + $0x30] sm:$0xff] %vm36_vm0, %v1086_v20  ;;  %v1356_v22 = vpop.f32.mrb[31].mxu0 }
 0x2ef   :  { %v1074_v23 = vpop.f32.mrb[28].mxu1 }
 0x2f0   :  { %v1087_v25 = vadd.f32 %v1074_v23, %v694_v21  ;;  %v1361_v12 = vpop.f32.mrb[29].mxu1 }
 0x2f1   :  { %v1077_v29 = vpop.f32.mrb[30].mxu1  ;;  %v1112_v50 = vld [vmem:[#allocation4 + $0x28] sm:$0xff] }
 0x2f2   :  { %1095 = vst.msk [vmem:[#allocation4 + $0x38] sm:$0xff] %vm36_vm0, %v1087_v25  ;;  %v1362_v33 = vpop.f32.mrb[31].mxu1 }
 0x2f5   :  { %v1113_v63 = vld [vmem:[#allocation4 + $0x30] sm:$0xff] }
 0x2f9   :  { %v1114_v43 = vld [vmem:[#allocation4 + $0x38] sm:$0xff] }
 0x321   :  { %v1134_v16 = vpop.permute.xlu1 %1133 }
 0x322   :  { %v1171_v37 = vmul.f32 %v1134_v16, %v1107_v0 }
 0x324   :  { %v1179_v42 = vpack.c.bf16 %v1171_v37, %v1171_v37 }
 0x325   :  { %v1139_v24 = vpop.permute.xlu0 %1138 }
 0x326   :  { %1188 = vst.msk [vmem:[%s1833_s3] sm:$0xf] %vm1187_vm4, %v1179_v42  ;;  %v1172_v26 = vmul.f32 %v1139_v24, %v1108_v27 }
 0x328   :  { %v1180_v28 = vpack.c.bf16 %v1172_v26, %v1172_v26 }
 0x329   :  { %v1144_v30 = vpop.permute.xlu1 %1143 }
 0x32a   :  { %1189 = vst.msk [vmem:[%s1833_s3 + $0x4] sm:$0xf] %vm1187_vm4, %v1180_v28  ;;  %v1173_v32 = vmul.f32 %v1144_v30, %v1109_v31 }
 0x32c   :  { %v1181_v34 = vpack.c.bf16 %v1173_v32, %v1173_v32 }
 0x32d   :  { %v1149_v36 = vpop.permute.xlu0 %1148 }
 0x32e   :  { %1190 = vst.msk [vmem:[%s1833_s3 + $0x8] sm:$0xf] %vm1187_vm4, %v1181_v34  ;;  %v1174_v38 = vmul.f32 %v1149_v36, %v1110_v35 }
 0x330   :  { %v1182_v39 = vpack.c.bf16 %v1174_v38, %v1174_v38 }
 0x331   :  { %v1154_v40 = vpop.permute.xlu1 %1153 }
 0x332   :  { %1191 = vst.msk [vmem:[%s1833_s3 + $0xc] sm:$0xf] %vm1187_vm4, %v1182_v39  ;;  %v1175_v48 = vmul.f32 %v1154_v40, %v1111_v41 }
 0x334   :  { %v1183_v49 = vpack.c.bf16 %v1175_v48, %v1175_v48 }
 0x335   :  { %v1159_v51 = vpop.permute.xlu0 %1158 }
 0x336   :  { %1192 = vst.msk [vmem:[%s1833_s3 + $0x10] sm:$0xf] %vm1187_vm4, %v1183_v49  ;;  %v1176_v54 = vmul.f32 %v1159_v51, %v1112_v50 }
 0x338   :  { %v1184_v55 = vpack.c.bf16 %v1176_v54, %v1176_v54 }
 0x339   :  { %v1164_v62 = vpop.permute.xlu1 %1163 }
 0x33a   :  { %1193 = vst.msk [vmem:[%s1833_s3 + $0x14] sm:$0xf] %vm1187_vm4, %v1184_v55  ;;  %v1177_v1 = vmul.f32 %v1164_v62, %v1113_v63 }
 0x33c   :  { %v1185_v2 = vpack.c.bf16 %v1177_v1, %v1177_v1 }
 0x33d   :  { %v1169_v44 = vpop.permute.xlu0 %1168 }
 0x33e   :  { %1194 = vst.msk [vmem:[%s1833_s3 + $0x18] sm:$0xf] %vm1187_vm4, %v1185_v2  ;;  %v1178_v46 = vmul.f32 %v1169_v44, %v1114_v43 }
 0x340   :  { %v1186_v45 = vpack.c.bf16 %v1178_v46, %v1178_v46 }
 0x342   :  { %1195 = vst.msk [vmem:[%s1833_s3 + $0x1c] sm:$0xf] %vm1187_vm4, %v1186_v45 }

</bundles_post_ra>
